<compile_context>
chip_gen: v6e
topology: v6e:2x2x1
jax: 0.10.0
libtpu: 0.0.40
codegen_flags: <defaults>
</compile_context>

<pallas_src>
import jax
import jax.numpy as jnp
import numpy as np
from jax.experimental import pallas as pl
from jax.experimental.pallas import tpu as pltpu

KH = KW = 5
CO = 6            # conv output channels (fixed by the module)
CO_P = 8          # conv channels padded inside the packed (ow, co) lane axis
OUT_LANES = 128   # FC output padded to a full lane width


def _round_up(x, m):
    return ((x + m - 1) // m) * m


def _pick_tn(n, h, cw):
    """Samples per grid step: fold batch into the MXU M dim, but keep >= 2
    grid blocks when possible (v7x megacore) and bound the VMEM input tile."""
    tn = min(max(n, 1), 8)
    if n >= 2:
        tn = min(tn, max(1, n // 2))            # at least 2 parallel blocks
    max_tile_bytes = 8 * 1024 * 1024            # safe per-buffer cap on v7x (64 MiB VMEM)
    tn = max(1, min(tn, max_tile_bytes // max(1, h * cw * 4)))
    return tn


def _lenet5_fused_kernel(x_ref, t_ref, bc_ref, wfc_ref, bf_ref, o_ref):
    """Fused conv(5x5) + bias + ReLU + avgpool(2x2) + FC + sigmoid.

    x_ref:   [TN, H, C*W]           f32  raw input rows (channels packed into lanes)
    t_ref:   [KH, C*W, OW*CO_P]     f32  width-Toeplitz conv weights (one slab per kh)
    bc_ref:  [1, OW*CO_P]           f32  conv bias tiled over ow
    wfc_ref: [OH, OW*CO_P, OUT_P]   f32  FC weights with the 2x2 avg-pool folded in
    bf_ref:  [1, OUT_P]             f32  FC bias
    o_ref:   [1, TN, OUT_P]         f32  sigmoid(FC) output (lane-dense)
    """
    tn, h, cw = x_ref.shape
    kh_total = t_ref.shape[0]
    owc = t_ref.shape[2]
    oh_total = h - kh_total + 1
    out_p = o_ref.shape[2]

    # ---- conv as KH accumulated Toeplitz matmuls (MXU, f32 accumulate) -----
    acc = jnp.zeros((tn * oh_total, owc), jnp.float32)
    for kh in range(kh_total):                        # static unroll (KH = 5)
        xs = x_ref[:, kh:kh + oh_total, :].reshape(tn * oh_total, cw)
        acc = acc + jnp.dot(xs, t_ref[kh], preferred_element_type=jnp.float32)

    # ---- conv bias + ReLU (the 2x2 pool is folded into the FC weights) -----
    hact = jnp.maximum(acc + bc_ref[...], 0.0)        # [TN*OH, OW*CO_P]
    hact = hact.reshape(tn, oh_total, owc)

    # ---- fused avg-pool + FC: per-conv-row weight slabs, accumulated -------
    out = jnp.zeros((tn, out_p), jnp.float32)
    for oh in range(oh_total):                        # static unroll (OH small)
        out = out + jnp.dot(hact[:, oh, :], wfc_ref[oh],
                            preferred_element_type=jnp.float32)

    # ---- FC bias + sigmoid ---------------------------------------------------
    z = out + bf_ref[...]
    o_ref[0] = 1.0 / (1.0 + jnp.exp(-z))


def lenet5_forward(x, conv_w, conv_b, fc_w, fc_b):
    """x: [N, C, H, W] (NCHW, as in PyTorch). Returns [N, OUT] f32."""
    N, C, H, W = x.shape
    OH, OW = H - KH + 1, W - KW + 1
    PH, PW = OH // 2, OW // 2
    OUT = fc_w.shape[0]
    assert fc_w.shape[1] == CO * PH * PW, "FC in_features inconsistent with input size"
    CW = C * W
    OWC = OW * CO_P
    OUT_P = _round_up(OUT, OUT_LANES)

    # ---- data: raw input only, channels packed into the lane axis [N, H, C*W]
    x_flat = jnp.transpose(x.astype(jnp.float32), (0, 2, 1, 3)).reshape(N, H, CW)

    # ---- weights: width-Toeplitz conv matrix
    #   T[kh, c*W + w, ow*CO_P + co] = conv_w[co, c, kh, w - ow] for 0 <= w-ow < KW
    w_t = jnp.transpose(conv_w.astype(jnp.float32), (2, 1, 3, 0))    # [KH, C, KW, CO]
    t5 = jnp.zeros((KH, C, W, OW, CO_P), jnp.float32)
    for kw in range(KW):
        diag = np.eye(W, OW, k=-kw, dtype=np.float32)                # [W, OW] static
        a = jnp.pad(w_t[:, :, kw, :], ((0, 0), (0, 0), (0, CO_P - CO)))
        t5 = t5 + jnp.einsum('wo,hck->hcwok', diag, a)
    t_mat = t5.reshape(KH, CW, OWC)

    # conv bias tiled over ow in the packed (ow, co) lane layout
    bconv = jnp.tile(jnp.pad(conv_b.astype(jnp.float32), (0, CO_P - CO)), OW)
    bconv = bconv.reshape(1, OWC)

    # FC weights with the 2x2 average pool folded in:
    #   wfc[oh, ow*CO_P + co, k] = 0.25 * fc_w[k, co*PH*PW + (oh//2)*PW + (ow//2)]
    w3 = fc_w.astype(jnp.float32).reshape(OUT, CO, PH, PW)
    w4 = 0.25 * jnp.repeat(jnp.repeat(w3, 2, axis=2), 2, axis=3)     # [OUT,CO,2PH,2PW]
    w4 = jnp.pad(w4, ((0, 0), (0, 0), (0, OH - 2 * PH), (0, OW - 2 * PW)))
    w5 = jnp.transpose(w4, (2, 3, 1, 0))                             # [OH, OW, CO, OUT]
    w5 = jnp.pad(w5, ((0, 0), (0, 0), (0, CO_P - CO), (0, OUT_P - OUT)))
    wfc = w5.reshape(OH, OWC, OUT_P)

    bfc = jnp.pad(fc_b.astype(jnp.float32), (0, OUT_P - OUT)).reshape(1, OUT_P)

    # ---- grid over batch blocks only (single fused kernel, no K reduction) --
    TN = _pick_tn(N, H, CW)
    NB = pl.cdiv(N, TN)
    N_pad = NB * TN
    if N_pad != N:
        x_flat = jnp.pad(x_flat, ((0, N_pad - N), (0, 0), (0, 0)))

    # TODO(synk): for very large images (e.g. the 384x384 input implied by
    # FC1 = 6*190*190) tile the conv-row axis with an FC accumulator instead of
    # keeping a whole sample's activations / FC-weight slab resident per step.
    out3 = pl.pallas_call(
        _lenet5_fused_kernel,
        out_shape=jax.ShapeDtypeStruct((NB, TN, OUT_P), jnp.float32),
        grid=(NB,),
        in_specs=[
            pl.BlockSpec((TN, H, CW), lambda b: (b, 0, 0)),
            pl.BlockSpec((KH, CW, OWC), lambda b: (0, 0, 0)),
            pl.BlockSpec((1, OWC), lambda b: (0, 0)),
            pl.BlockSpec((OH, OWC, OUT_P), lambda b: (0, 0, 0)),
            pl.BlockSpec((1, OUT_P), lambda b: (0, 0)),
        ],
        out_specs=pl.BlockSpec((1, TN, OUT_P), lambda b: (b, 0, 0)),
        compiler_params=pltpu.CompilerParams(
            dimension_semantics=("parallel",)),
    )(x_flat, t_mat, bconv, wfc, bfc)

    return out3.reshape(N_pad, OUT_P)[:N, :OUT]


def lenet5_reference(x, conv_w, conv_b, fc_w, fc_b):
    """Pure-JAX f32 reference matching the PyTorch forward."""
    conv = jax.lax.conv_general_dilated(
        x.astype(jnp.float32), conv_w.astype(jnp.float32),
        window_strides=(1, 1), padding="VALID",
        dimension_numbers=("NCHW", "OIHW", "NCHW"))
    h = jax.nn.relu(conv + conv_b[None, :, None, None])
    n, co, oh, ow = h.shape
    ph, pw = oh // 2, ow // 2
    h = h[:, :, :2 * ph, :2 * pw].reshape(n, co, ph, 2, pw, 2).mean(axis=(3, 5))
    flat = h.reshape(n, -1)
    return jax.nn.sigmoid(flat @ fc_w.T + fc_b[None, :])


if __name__ == "__main__":
    # Small synthetic shapes consistent with the module structure
    # (FC in_features = 6 * ((H-4)//2) * ((W-4)//2)).
    N, C, H, W = 2, 4, 16, 16
    OUT_DIM = 10
    OH, OW = H - KH + 1, W - KW + 1          # 12, 12
    PH, PW = OH // 2, OW // 2                # 6, 6
    F = CO * PH * PW                         # 216

    key = jax.random.PRNGKey(0)
    k_x, k_cw, k_cb, k_fw, k_fb = jax.random.split(key, 5)

    x = jax.random.normal(k_x, (N, C, H, W), dtype=jnp.float32)
    conv_w = jax.random.normal(k_cw, (CO, C, KH, KW), jnp.float32) * 0.1
    conv_b = jax.random.normal(k_cb, (CO,), jnp.float32) * 0.1
    fc_w = jax.random.normal(k_fw, (OUT_DIM, F), jnp.float32) * 0.05
    fc_b = jax.random.normal(k_fb, (OUT_DIM,), jnp.float32) * 0.05

    fwd = jax.jit(lenet5_forward)
    out = fwd(x, conv_w, conv_b, fc_w, fc_b)
    jax.block_until_ready(out)
    assert out.shape == (N, OUT_DIM)

    ref = lenet5_reference(x, conv_w, conv_b, fc_w, fc_b)
    max_err = float(jnp.max(jnp.abs(out - ref)))
    assert max_err < 2e-2, f"mismatch vs f32 reference: {max_err}"

    print("KERNEL_OK")
</pallas_src>

<mosaic_0001>
module attributes {stable_mosaic.version = 11 : i64} {
  func.func @_lenet5_fused_kernel(%arg0: i32, %arg1: memref<1x16x64xf32, #tpu.memory_space<vmem>>, %arg2: memref<5x64x96xf32, #tpu.memory_space<vmem>>, %arg3: memref<1x96xf32, #tpu.memory_space<vmem>>, %arg4: memref<12x96x128xf32, #tpu.memory_space<vmem>>, %arg5: memref<1x128xf32, #tpu.memory_space<vmem>>, %arg6: memref<1x1x128xf32, #tpu.memory_space<vmem>>) attributes {dimension_semantics = [#tpu.dimension_semantics<parallel>], iteration_bounds = array<i64: 2>, scalar_prefetch = 0 : i64, scratch_operands = 0 : i64, tpu.core_type = #tpu.core_type<tc>, window_params = [{transform_indices = @transform_0, window_bounds = array<i64: 1, 16, 64>}, {pipeline_mode = #tpu.pipeline_mode<synchronous>, transform_indices = @transform_1, window_bounds = array<i64: 5, 64, 96>}, {pipeline_mode = #tpu.pipeline_mode<synchronous>, transform_indices = @transform_2, window_bounds = array<i64: 1, 96>}, {pipeline_mode = #tpu.pipeline_mode<synchronous>, transform_indices = @transform_3, window_bounds = array<i64: 12, 96, 128>}, {pipeline_mode = #tpu.pipeline_mode<synchronous>, transform_indices = @transform_4, window_bounds = array<i64: 1, 128>}, {transform_indices = @transform_5, window_bounds = array<i64: 1, 1, 128>}]} {
    %cst = arith.constant 0.000000e+00 : f32
    %0 = vector.broadcast %cst : f32 to vector<12x96xf32>
    %c0 = arith.constant 0 : index
    %c0_0 = arith.constant 0 : index
    %c0_1 = arith.constant 0 : index
    %1 = vector.load %arg1[%c0, %c0_0, %c0_1] : memref<1x16x64xf32, #tpu.memory_space<vmem>>, vector<1x12x64xf32>
    %2 = vector.shape_cast %1 : vector<1x12x64xf32> to vector<12x64xf32>
    %c0_2 = arith.constant 0 : index
    %c0_3 = arith.constant 0 : index
    %c0_4 = arith.constant 0 : index
    %3 = vector.load %arg2[%c0_2, %c0_3, %c0_4] : memref<5x64x96xf32, #tpu.memory_space<vmem>>, vector<1x64x96xf32>
    %4 = vector.shape_cast %3 : vector<1x64x96xf32> to vector<64x96xf32>
    %cst_5 = arith.constant dense<0.000000e+00> : vector<12x96xf32>
    %5 = tpu.matmul %2, %4, %cst_5 {dimension_numbers = #tpu.dot_dimension_numbers<[1], [0], [0], [1], [0, 0, 1, 1], [], []>} : vector<12x64xf32>, vector<64x96xf32>, vector<12x96xf32> -> vector<12x96xf32>
    %6 = arith.addf %0, %5 : vector<12x96xf32>
    %c0_6 = arith.constant 0 : index
    %c1 = arith.constant 1 : index
    %c0_7 = arith.constant 0 : index
    %7 = vector.load %arg1[%c0_6, %c1, %c0_7] : memref<1x16x64xf32, #tpu.memory_space<vmem>>, vector<1x12x64xf32>
    %8 = vector.shape_cast %7 : vector<1x12x64xf32> to vector<12x64xf32>
    %c1_8 = arith.constant 1 : index
    %c0_9 = arith.constant 0 : index
    %c0_10 = arith.constant 0 : index
    %9 = vector.load %arg2[%c1_8, %c0_9, %c0_10] : memref<5x64x96xf32, #tpu.memory_space<vmem>>, vector<1x64x96xf32>
    %10 = vector.shape_cast %9 : vector<1x64x96xf32> to vector<64x96xf32>
    %cst_11 = arith.constant dense<0.000000e+00> : vector<12x96xf32>
    %11 = tpu.matmul %8, %10, %cst_11 {dimension_numbers = #tpu.dot_dimension_numbers<[1], [0], [0], [1], [0, 0, 1, 1], [], []>} : vector<12x64xf32>, vector<64x96xf32>, vector<12x96xf32> -> vector<12x96xf32>
    %12 = arith.addf %6, %11 : vector<12x96xf32>
    %c0_12 = arith.constant 0 : index
    %c2 = arith.constant 2 : index
    %c0_13 = arith.constant 0 : index
    %13 = vector.load %arg1[%c0_12, %c2, %c0_13] : memref<1x16x64xf32, #tpu.memory_space<vmem>>, vector<1x12x64xf32>
    %14 = vector.shape_cast %13 : vector<1x12x64xf32> to vector<12x64xf32>
    %c2_14 = arith.constant 2 : index
    %c0_15 = arith.constant 0 : index
    %c0_16 = arith.constant 0 : index
    %15 = vector.load %arg2[%c2_14, %c0_15, %c0_16] : memref<5x64x96xf32, #tpu.memory_space<vmem>>, vector<1x64x96xf32>
    %16 = vector.shape_cast %15 : vector<1x64x96xf32> to vector<64x96xf32>
    %cst_17 = arith.constant dense<0.000000e+00> : vector<12x96xf32>
    %17 = tpu.matmul %14, %16, %cst_17 {dimension_numbers = #tpu.dot_dimension_numbers<[1], [0], [0], [1], [0, 0, 1, 1], [], []>} : vector<12x64xf32>, vector<64x96xf32>, vector<12x96xf32> -> vector<12x96xf32>
    %18 = arith.addf %12, %17 : vector<12x96xf32>
    %c0_18 = arith.constant 0 : index
    %c3 = arith.constant 3 : index
    %c0_19 = arith.constant 0 : index
    %19 = vector.load %arg1[%c0_18, %c3, %c0_19] : memref<1x16x64xf32, #tpu.memory_space<vmem>>, vector<1x12x64xf32>
    %20 = vector.shape_cast %19 : vector<1x12x64xf32> to vector<12x64xf32>
    %c3_20 = arith.constant 3 : index
    %c0_21 = arith.constant 0 : index
    %c0_22 = arith.constant 0 : index
    %21 = vector.load %arg2[%c3_20, %c0_21, %c0_22] : memref<5x64x96xf32, #tpu.memory_space<vmem>>, vector<1x64x96xf32>
    %22 = vector.shape_cast %21 : vector<1x64x96xf32> to vector<64x96xf32>
    %cst_23 = arith.constant dense<0.000000e+00> : vector<12x96xf32>
    %23 = tpu.matmul %20, %22, %cst_23 {dimension_numbers = #tpu.dot_dimension_numbers<[1], [0], [0], [1], [0, 0, 1, 1], [], []>} : vector<12x64xf32>, vector<64x96xf32>, vector<12x96xf32> -> vector<12x96xf32>
    %24 = arith.addf %18, %23 : vector<12x96xf32>
    %c0_24 = arith.constant 0 : index
    %c4 = arith.constant 4 : index
    %c0_25 = arith.constant 0 : index
    %25 = vector.load %arg1[%c0_24, %c4, %c0_25] : memref<1x16x64xf32, #tpu.memory_space<vmem>>, vector<1x12x64xf32>
    %26 = vector.shape_cast %25 : vector<1x12x64xf32> to vector<12x64xf32>
    %c4_26 = arith.constant 4 : index
    %c0_27 = arith.constant 0 : index
    %c0_28 = arith.constant 0 : index
    %27 = vector.load %arg2[%c4_26, %c0_27, %c0_28] : memref<5x64x96xf32, #tpu.memory_space<vmem>>, vector<1x64x96xf32>
    %28 = vector.shape_cast %27 : vector<1x64x96xf32> to vector<64x96xf32>
    %cst_29 = arith.constant dense<0.000000e+00> : vector<12x96xf32>
    %29 = tpu.matmul %26, %28, %cst_29 {dimension_numbers = #tpu.dot_dimension_numbers<[1], [0], [0], [1], [0, 0, 1, 1], [], []>} : vector<12x64xf32>, vector<64x96xf32>, vector<12x96xf32> -> vector<12x96xf32>
    %30 = arith.addf %24, %29 : vector<12x96xf32>
    %c0_30 = arith.constant 0 : index
    %c0_31 = arith.constant 0 : index
    %31 = vector.load %arg3[%c0_30, %c0_31] : memref<1x96xf32, #tpu.memory_space<vmem>>, vector<1x96xf32>
    %32 = vector.broadcast %31 : vector<1x96xf32> to vector<12x96xf32>
    %33 = arith.addf %30, %32 : vector<12x96xf32>
    %cst_32 = arith.constant 0.000000e+00 : f32
    %34 = vector.broadcast %cst_32 : f32 to vector<12x96xf32>
    %35 = arith.maximumf %33, %34 : vector<12x96xf32>
    %36 = vector.shape_cast %35 : vector<12x96xf32> to vector<1x12x96xf32>
    %cst_33 = arith.constant 0.000000e+00 : f32
    %37 = vector.broadcast %cst_33 : f32 to vector<1x128xf32>
    %38 = vector.extract_strided_slice %36 {offsets = [0, 0, 0], sizes = [1, 1, 96], strides = [1, 1, 1]} : vector<1x12x96xf32> to vector<1x1x96xf32>
    %39 = vector.shape_cast %38 : vector<1x1x96xf32> to vector<1x96xf32>
    %c0_34 = arith.constant 0 : index
    %c0_35 = arith.constant 0 : index
    %c0_36 = arith.constant 0 : index
    %40 = vector.load %arg4[%c0_34, %c0_35, %c0_36] : memref<12x96x128xf32, #tpu.memory_space<vmem>>, vector<1x96x128xf32>
    %41 = vector.shape_cast %40 : vector<1x96x128xf32> to vector<96x128xf32>
    %cst_37 = arith.constant dense<0.000000e+00> : vector<1x128xf32>
    %42 = tpu.matmul %39, %41, %cst_37 {dimension_numbers = #tpu.dot_dimension_numbers<[1], [0], [0], [1], [0, 0, 1, 1], [], []>} : vector<1x96xf32>, vector<96x128xf32>, vector<1x128xf32> -> vector<1x128xf32>
    %43 = arith.addf %37, %42 : vector<1x128xf32>
    %44 = vector.extract_strided_slice %36 {offsets = [0, 1, 0], sizes = [1, 1, 96], strides = [1, 1, 1]} : vector<1x12x96xf32> to vector<1x1x96xf32>
    %45 = vector.shape_cast %44 : vector<1x1x96xf32> to vector<1x96xf32>
    %c1_38 = arith.constant 1 : index
    %c0_39 = arith.constant 0 : index
    %c0_40 = arith.constant 0 : index
    %46 = vector.load %arg4[%c1_38, %c0_39, %c0_40] : memref<12x96x128xf32, #tpu.memory_space<vmem>>, vector<1x96x128xf32>
    %47 = vector.shape_cast %46 : vector<1x96x128xf32> to vector<96x128xf32>
    %cst_41 = arith.constant dense<0.000000e+00> : vector<1x128xf32>
    %48 = tpu.matmul %45, %47, %cst_41 {dimension_numbers = #tpu.dot_dimension_numbers<[1], [0], [0], [1], [0, 0, 1, 1], [], []>} : vector<1x96xf32>, vector<96x128xf32>, vector<1x128xf32> -> vector<1x128xf32>
    %49 = arith.addf %43, %48 : vector<1x128xf32>
    %50 = vector.extract_strided_slice %36 {offsets = [0, 2, 0], sizes = [1, 1, 96], strides = [1, 1, 1]} : vector<1x12x96xf32> to vector<1x1x96xf32>
    %51 = vector.shape_cast %50 : vector<1x1x96xf32> to vector<1x96xf32>
    %c2_42 = arith.constant 2 : index
    %c0_43 = arith.constant 0 : index
    %c0_44 = arith.constant 0 : index
    %52 = vector.load %arg4[%c2_42, %c0_43, %c0_44] : memref<12x96x128xf32, #tpu.memory_space<vmem>>, vector<1x96x128xf32>
    %53 = vector.shape_cast %52 : vector<1x96x128xf32> to vector<96x128xf32>
    %cst_45 = arith.constant dense<0.000000e+00> : vector<1x128xf32>
    %54 = tpu.matmul %51, %53, %cst_45 {dimension_numbers = #tpu.dot_dimension_numbers<[1], [0], [0], [1], [0, 0, 1, 1], [], []>} : vector<1x96xf32>, vector<96x128xf32>, vector<1x128xf32> -> vector<1x128xf32>
    %55 = arith.addf %49, %54 : vector<1x128xf32>
    %56 = vector.extract_strided_slice %36 {offsets = [0, 3, 0], sizes = [1, 1, 96], strides = [1, 1, 1]} : vector<1x12x96xf32> to vector<1x1x96xf32>
    %57 = vector.shape_cast %56 : vector<1x1x96xf32> to vector<1x96xf32>
    %c3_46 = arith.constant 3 : index
    %c0_47 = arith.constant 0 : index
    %c0_48 = arith.constant 0 : index
    %58 = vector.load %arg4[%c3_46, %c0_47, %c0_48] : memref<12x96x128xf32, #tpu.memory_space<vmem>>, vector<1x96x128xf32>
    %59 = vector.shape_cast %58 : vector<1x96x128xf32> to vector<96x128xf32>
    %cst_49 = arith.constant dense<0.000000e+00> : vector<1x128xf32>
    %60 = tpu.matmul %57, %59, %cst_49 {dimension_numbers = #tpu.dot_dimension_numbers<[1], [0], [0], [1], [0, 0, 1, 1], [], []>} : vector<1x96xf32>, vector<96x128xf32>, vector<1x128xf32> -> vector<1x128xf32>
    %61 = arith.addf %55, %60 : vector<1x128xf32>
    %62 = vector.extract_strided_slice %36 {offsets = [0, 4, 0], sizes = [1, 1, 96], strides = [1, 1, 1]} : vector<1x12x96xf32> to vector<1x1x96xf32>
    %63 = vector.shape_cast %62 : vector<1x1x96xf32> to vector<1x96xf32>
    %c4_50 = arith.constant 4 : index
    %c0_51 = arith.constant 0 : index
    %c0_52 = arith.constant 0 : index
    %64 = vector.load %arg4[%c4_50, %c0_51, %c0_52] : memref<12x96x128xf32, #tpu.memory_space<vmem>>, vector<1x96x128xf32>
    %65 = vector.shape_cast %64 : vector<1x96x128xf32> to vector<96x128xf32>
    %cst_53 = arith.constant dense<0.000000e+00> : vector<1x128xf32>
    %66 = tpu.matmul %63, %65, %cst_53 {dimension_numbers = #tpu.dot_dimension_numbers<[1], [0], [0], [1], [0, 0, 1, 1], [], []>} : vector<1x96xf32>, vector<96x128xf32>, vector<1x128xf32> -> vector<1x128xf32>
    %67 = arith.addf %61, %66 : vector<1x128xf32>
    %68 = vector.extract_strided_slice %36 {offsets = [0, 5, 0], sizes = [1, 1, 96], strides = [1, 1, 1]} : vector<1x12x96xf32> to vector<1x1x96xf32>
    %69 = vector.shape_cast %68 : vector<1x1x96xf32> to vector<1x96xf32>
    %c5 = arith.constant 5 : index
    %c0_54 = arith.constant 0 : index
    %c0_55 = arith.constant 0 : index
    %70 = vector.load %arg4[%c5, %c0_54, %c0_55] : memref<12x96x128xf32, #tpu.memory_space<vmem>>, vector<1x96x128xf32>
    %71 = vector.shape_cast %70 : vector<1x96x128xf32> to vector<96x128xf32>
    %cst_56 = arith.constant dense<0.000000e+00> : vector<1x128xf32>
    %72 = tpu.matmul %69, %71, %cst_56 {dimension_numbers = #tpu.dot_dimension_numbers<[1], [0], [0], [1], [0, 0, 1, 1], [], []>} : vector<1x96xf32>, vector<96x128xf32>, vector<1x128xf32> -> vector<1x128xf32>
    %73 = arith.addf %67, %72 : vector<1x128xf32>
    %74 = vector.extract_strided_slice %36 {offsets = [0, 6, 0], sizes = [1, 1, 96], strides = [1, 1, 1]} : vector<1x12x96xf32> to vector<1x1x96xf32>
    %75 = vector.shape_cast %74 : vector<1x1x96xf32> to vector<1x96xf32>
    %c6 = arith.constant 6 : index
    %c0_57 = arith.constant 0 : index
    %c0_58 = arith.constant 0 : index
    %76 = vector.load %arg4[%c6, %c0_57, %c0_58] : memref<12x96x128xf32, #tpu.memory_space<vmem>>, vector<1x96x128xf32>
    %77 = vector.shape_cast %76 : vector<1x96x128xf32> to vector<96x128xf32>
    %cst_59 = arith.constant dense<0.000000e+00> : vector<1x128xf32>
    %78 = tpu.matmul %75, %77, %cst_59 {dimension_numbers = #tpu.dot_dimension_numbers<[1], [0], [0], [1], [0, 0, 1, 1], [], []>} : vector<1x96xf32>, vector<96x128xf32>, vector<1x128xf32> -> vector<1x128xf32>
    %79 = arith.addf %73, %78 : vector<1x128xf32>
    %80 = vector.extract_strided_slice %36 {offsets = [0, 7, 0], sizes = [1, 1, 96], strides = [1, 1, 1]} : vector<1x12x96xf32> to vector<1x1x96xf32>
    %81 = vector.shape_cast %80 : vector<1x1x96xf32> to vector<1x96xf32>
    %c7 = arith.constant 7 : index
    %c0_60 = arith.constant 0 : index
    %c0_61 = arith.constant 0 : index
    %82 = vector.load %arg4[%c7, %c0_60, %c0_61] : memref<12x96x128xf32, #tpu.memory_space<vmem>>, vector<1x96x128xf32>
    %83 = vector.shape_cast %82 : vector<1x96x128xf32> to vector<96x128xf32>
    %cst_62 = arith.constant dense<0.000000e+00> : vector<1x128xf32>
    %84 = tpu.matmul %81, %83, %cst_62 {dimension_numbers = #tpu.dot_dimension_numbers<[1], [0], [0], [1], [0, 0, 1, 1], [], []>} : vector<1x96xf32>, vector<96x128xf32>, vector<1x128xf32> -> vector<1x128xf32>
    %85 = arith.addf %79, %84 : vector<1x128xf32>
    %86 = vector.extract_strided_slice %36 {offsets = [0, 8, 0], sizes = [1, 1, 96], strides = [1, 1, 1]} : vector<1x12x96xf32> to vector<1x1x96xf32>
    %87 = vector.shape_cast %86 : vector<1x1x96xf32> to vector<1x96xf32>
    %c8 = arith.constant 8 : index
    %c0_63 = arith.constant 0 : index
    %c0_64 = arith.constant 0 : index
    %88 = vector.load %arg4[%c8, %c0_63, %c0_64] : memref<12x96x128xf32, #tpu.memory_space<vmem>>, vector<1x96x128xf32>
    %89 = vector.shape_cast %88 : vector<1x96x128xf32> to vector<96x128xf32>
    %cst_65 = arith.constant dense<0.000000e+00> : vector<1x128xf32>
    %90 = tpu.matmul %87, %89, %cst_65 {dimension_numbers = #tpu.dot_dimension_numbers<[1], [0], [0], [1], [0, 0, 1, 1], [], []>} : vector<1x96xf32>, vector<96x128xf32>, vector<1x128xf32> -> vector<1x128xf32>
    %91 = arith.addf %85, %90 : vector<1x128xf32>
    %92 = vector.extract_strided_slice %36 {offsets = [0, 9, 0], sizes = [1, 1, 96], strides = [1, 1, 1]} : vector<1x12x96xf32> to vector<1x1x96xf32>
    %93 = vector.shape_cast %92 : vector<1x1x96xf32> to vector<1x96xf32>
    %c9 = arith.constant 9 : index
    %c0_66 = arith.constant 0 : index
    %c0_67 = arith.constant 0 : index
    %94 = vector.load %arg4[%c9, %c0_66, %c0_67] : memref<12x96x128xf32, #tpu.memory_space<vmem>>, vector<1x96x128xf32>
    %95 = vector.shape_cast %94 : vector<1x96x128xf32> to vector<96x128xf32>
    %cst_68 = arith.constant dense<0.000000e+00> : vector<1x128xf32>
    %96 = tpu.matmul %93, %95, %cst_68 {dimension_numbers = #tpu.dot_dimension_numbers<[1], [0], [0], [1], [0, 0, 1, 1], [], []>} : vector<1x96xf32>, vector<96x128xf32>, vector<1x128xf32> -> vector<1x128xf32>
    %97 = arith.addf %91, %96 : vector<1x128xf32>
    %98 = vector.extract_strided_slice %36 {offsets = [0, 10, 0], sizes = [1, 1, 96], strides = [1, 1, 1]} : vector<1x12x96xf32> to vector<1x1x96xf32>
    %99 = vector.shape_cast %98 : vector<1x1x96xf32> to vector<1x96xf32>
    %c10 = arith.constant 10 : index
    %c0_69 = arith.constant 0 : index
    %c0_70 = arith.constant 0 : index
    %100 = vector.load %arg4[%c10, %c0_69, %c0_70] : memref<12x96x128xf32, #tpu.memory_space<vmem>>, vector<1x96x128xf32>
    %101 = vector.shape_cast %100 : vector<1x96x128xf32> to vector<96x128xf32>
    %cst_71 = arith.constant dense<0.000000e+00> : vector<1x128xf32>
    %102 = tpu.matmul %99, %101, %cst_71 {dimension_numbers = #tpu.dot_dimension_numbers<[1], [0], [0], [1], [0, 0, 1, 1], [], []>} : vector<1x96xf32>, vector<96x128xf32>, vector<1x128xf32> -> vector<1x128xf32>
    %103 = arith.addf %97, %102 : vector<1x128xf32>
    %104 = vector.extract_strided_slice %36 {offsets = [0, 11, 0], sizes = [1, 1, 96], strides = [1, 1, 1]} : vector<1x12x96xf32> to vector<1x1x96xf32>
    %105 = vector.shape_cast %104 : vector<1x1x96xf32> to vector<1x96xf32>
    %c11 = arith.constant 11 : index
    %c0_72 = arith.constant 0 : index
    %c0_73 = arith.constant 0 : index
    %106 = vector.load %arg4[%c11, %c0_72, %c0_73] : memref<12x96x128xf32, #tpu.memory_space<vmem>>, vector<1x96x128xf32>
    %107 = vector.shape_cast %106 : vector<1x96x128xf32> to vector<96x128xf32>
    %cst_74 = arith.constant dense<0.000000e+00> : vector<1x128xf32>
    %108 = tpu.matmul %105, %107, %cst_74 {dimension_numbers = #tpu.dot_dimension_numbers<[1], [0], [0], [1], [0, 0, 1, 1], [], []>} : vector<1x96xf32>, vector<96x128xf32>, vector<1x128xf32> -> vector<1x128xf32>
    %109 = arith.addf %103, %108 : vector<1x128xf32>
    %c0_75 = arith.constant 0 : index
    %c0_76 = arith.constant 0 : index
    %110 = vector.load %arg5[%c0_75, %c0_76] : memref<1x128xf32, #tpu.memory_space<vmem>>, vector<1x128xf32>
    %111 = arith.addf %109, %110 : vector<1x128xf32>
    %cst_77 = arith.constant 0.000000e+00 : f32
    %112 = vector.broadcast %cst_77 : f32 to vector<1x128xf32>
    %113 = arith.subf %112, %111 : vector<1x128xf32>
    %114 = math.exp %113 : vector<1x128xf32>
    %cst_78 = arith.constant 1.000000e+00 : f32
    %115 = vector.broadcast %cst_78 : f32 to vector<1x128xf32>
    %116 = arith.addf %115, %114 : vector<1x128xf32>
    %cst_79 = arith.constant 1.000000e+00 : f32
    %117 = vector.broadcast %cst_79 : f32 to vector<1x128xf32>
    %118 = arith.divf %117, %116 : vector<1x128xf32>
    %c0_80 = arith.constant 0 : index
    %c0_81 = arith.constant 0 : index
    %c0_82 = arith.constant 0 : index
    %119 = vector.load %arg6[%c0_80, %c0_81, %c0_82] : memref<1x1x128xf32, #tpu.memory_space<vmem>>, vector<1x1x128xf32>
    %120 = vector.shape_cast %119 : vector<1x1x128xf32> to vector<1x128xf32>
    %121 = vector.shape_cast %118 : vector<1x128xf32> to vector<1x1x128xf32>
    tpu.vector_store %arg6[%c0_80, %c0_81, %c0_82], %121 {strides = array<i32>} : memref<1x1x128xf32, #tpu.memory_space<vmem>>, vector<1x1x128xf32>,
    return
  }
  func.func @transform_0(%arg0: i32) -> (i32, i32, i32) {
    %c0_i32 = arith.constant 0 : i32
    %c0_i32_0 = arith.constant 0 : i32
    %c0_i32_1 = arith.constant 0 : i32
    return %arg0, %c0_i32, %c0_i32_0 : i32, i32, i32
  }
  func.func @transform_1(%arg0: i32) -> (i32, i32, i32) {
    %c0_i32 = arith.constant 0 : i32
    %c0_i32_0 = arith.constant 0 : i32
    %c0_i32_1 = arith.constant 0 : i32
    %c0_i32_2 = arith.constant 0 : i32
    return %c0_i32, %c0_i32_0, %c0_i32_1 : i32, i32, i32
  }
  func.func @transform_2(%arg0: i32) -> (i32, i32) {
    %c0_i32 = arith.constant 0 : i32
    %c0_i32_0 = arith.constant 0 : i32
    %c0_i32_1 = arith.constant 0 : i32
    return %c0_i32, %c0_i32_0 : i32, i32
  }
  func.func @transform_3(%arg0: i32) -> (i32, i32, i32) {
    %c0_i32 = arith.constant 0 : i32
    %c0_i32_0 = arith.constant 0 : i32
    %c0_i32_1 = arith.constant 0 : i32
    %c0_i32_2 = arith.constant 0 : i32
    return %c0_i32, %c0_i32_0, %c0_i32_1 : i32, i32, i32
  }
  func.func @transform_4(%arg0: i32) -> (i32, i32) {
    %c0_i32 = arith.constant 0 : i32
    %c0_i32_0 = arith.constant 0 : i32
    %c0_i32_1 = arith.constant 0 : i32
    return %c0_i32, %c0_i32_0 : i32, i32
  }
  func.func @transform_5(%arg0: i32) -> (i32, i32, i32) {
    %c0_i32 = arith.constant 0 : i32
    %c0_i32_0 = arith.constant 0 : i32
    %c0_i32_1 = arith.constant 0 : i32
    return %arg0, %c0_i32, %c0_i32_0 : i32, i32, i32
  }
}

</mosaic_0001>

<bundles_post_ra>
// kernel: tile.8
= control target key start
LH: loop header
LB: loop body
LE: loop exit
PB: predicated region body
PF: predicated region fallthrough
CT: control target
= control target key end

     0   :  { %s28_s0 = inlined_call_operand.vmem [shape: f32[8], index: 0, kind: input, shape index: {}]   ;;  %s29_s1 = inlined_call_operand.vmem [shape: f32[12,8], index: 1, kind: output, shape index: {}]  }
   0x1   :  { %v4_v0 = vld [vmem:[%s28_s0] ss:$0 sm:$0xff] }
   0x2   :  { %5 = vst [vmem:[%s29_s1] sm:$0xff] %v4_v0  ;;  %8 = vst [vmem:[%s29_s1 + $0x8] sm:$0xff] %v4_v0 }

// kernel: tile.9
= control target key start
LH: loop header
LB: loop body
LE: loop exit
PB: predicated region body
PF: predicated region fallthrough
CT: control target
= control target key end

     0   :  { %s101_s10 = smov 88   ;;  %s102_s11 = smov 72   ;;  %vm3_vm0 = vcmask 64512   ;;  %vm9_vm1 = vcmask 786112   ;;  %vm15_vm2 = vcmask 720512   ;;  %vm21_vm3 = vcmask 654912   ;;  %s161_s0 = inlined_call_operand.vmem [shape: f32[12,8], index: 0, kind: input, shape index: {}]   ;;  %s162_s1 = inlined_call_operand.vmem [shape: f32[1,96], index: 1, kind: output, shape index: {}]  }
   0x1   :  { %v79_v0 = vld [vmem:[%s161_s0 + $0xb] sm:$0x1]   ;;  %v81_v1 = vld [vmem:[%s161_s0 + $0x9] sm:$0x1]   ;;  %v80_v2 = vld [vmem:[%s161_s0 + $0xa] sm:$0x1]  }
   0x2   :  { %7 = vrot.lane.b32.xlu0 %v79_v0, %s101_s10  ;;  %19 = vrot.lane.b32.xlu1 %v81_v1, %s102_s11  ;;  %v82_v3 = vld [vmem:[%s161_s0 + $0x8] sm:$0x1]   ;;  %s103_s16 = smov 80   ;;  %s104_s17 = smov 64   ;;  %v83_v4 = vld [vmem:[%s161_s0 + $0x7] sm:$0x1]  }
   0x3   :  { %v2_v5 = vld [vmem:[%s161_s0] sm:$0x1]   ;;  %v84_v6 = vld [vmem:[%s161_s0 + $0x6] sm:$0x1]   ;;  %s105_s24 = smov 56   ;;  %s106_s25 = smov 48  }
   0x4   :  { %4 = vst.msk [vmem:[#allocation0] sm:$0x1] %vm3_vm0, %v2_v5   ;;  %v85_v7 = vld [vmem:[%s161_s0 + $0x5] sm:$0x1]   ;;  %v86_v8 = vld [vmem:[%s161_s0 + $0x4] sm:$0x1]  }
   0x5   :  { %s107_s30 = smov 40   ;;  %s108_s2 = smov 32   ;;  %v87_v9 = vld [vmem:[%s161_s0 + $0x3] sm:$0x1]   ;;  %v88_v10 = vld [vmem:[%s161_s0 + $0x2] sm:$0x1]  }
   0x6   :  { %13 = vrot.lane.b32.xlu0 %v80_v2, %s103_s16  ;;  %25 = vrot.lane.b32.xlu1 %v82_v3, %s104_s17  ;;  %s109_s7 = smov 24   ;;  %s110_s8 = smov 16   ;;  %v89_v11 = vld [vmem:[%s161_s0 + $0x1] sm:$0x1]   ;;  %vm27_vm4 = vcmask 589312   ;;  %vm33_vm5 = vcmask 523712  }
   0x7   :  { %s111_s0 = smov 8   ;;  %vm39_vm6 = vcmask 458112   ;;  %vm45_vm7 = vcmask 392512   ;;  %vm51_vm8 = vcmask 326912   ;;  %vm57_vm9 = vcmask 261312  }
   0x8   :  { %vm63_vm10 = vcmask 195712   ;;  %vm69_vm11 = vcmask 130112  }
   0xa   :  { %31 = vrot.lane.b32.xlu0 %v83_v4, %s105_s24  ;;  %37 = vrot.lane.b32.xlu1 %v84_v6, %s106_s25 }
   0xe   :  { %43 = vrot.lane.b32.xlu0 %v85_v7, %s107_s30  ;;  %49 = vrot.lane.b32.xlu1 %v86_v8, %s108_s2 }
  0x12   :  { %55 = vrot.lane.b32.xlu0 %v87_v9, %s109_s7  ;;  %61 = vrot.lane.b32.xlu1 %v88_v10, %s110_s8 }
  0x16   :  { %67 = vrot.lane.b32.xlu0 %v89_v11, %s111_s0 }
  0x74   :  { %v8_v12 = vpop.permute.xlu0 %7   ;;  %v20_v13 = vpop.permute.xlu1 %19  }
  0x75   :  { %10 = vst.msk [vmem:[#allocation0] sm:$0x1] %vm9_vm1, %v8_v12  }
  0x78   :  { %v14_v14 = vpop.permute.xlu0 %13   ;;  %v26_v15 = vpop.permute.xlu1 %25  }
  0x79   :  { %16 = vst.msk [vmem:[#allocation0] sm:$0x1] %vm15_vm2, %v14_v14  }
  0x7a   :  { %22 = vst.msk [vmem:[#allocation0] sm:$0x1] %vm21_vm3, %v20_v13  }
  0x7b   :  { %28 = vst.msk [vmem:[#allocation0] sm:$0x1] %vm27_vm4, %v26_v15  }
  0x7c   :  { %v32_v16 = vpop.permute.xlu0 %31   ;;  %v38_v17 = vpop.permute.xlu1 %37  }
  0x7d   :  { %34 = vst.msk [vmem:[#allocation0] sm:$0x1] %vm33_vm5, %v32_v16  }
  0x7e   :  { %40 = vst.msk [vmem:[#allocation0] sm:$0x1] %vm39_vm6, %v38_v17  }
  0x80   :  { %v44_v18 = vpop.permute.xlu0 %43   ;;  %v50_v19 = vpop.permute.xlu1 %49  }
  0x81   :  { %46 = vst.msk [vmem:[#allocation0] sm:$0x1] %vm45_vm7, %v44_v18  }
  0x82   :  { %52 = vst.msk [vmem:[#allocation0] sm:$0x1] %vm51_vm8, %v50_v19  }
  0x84   :  { %v56_v20 = vpop.permute.xlu0 %55   ;;  %v62_v21 = vpop.permute.xlu1 %61  }
  0x85   :  { %58 = vst.msk [vmem:[#allocation0] sm:$0x1] %vm57_vm9, %v56_v20  }
  0x86   :  { %64 = vst.msk [vmem:[#allocation0] sm:$0x1] %vm63_vm10, %v62_v21  }
  0x88   :  { %v68_v22 = vpop.permute.xlu0 %67  }
  0x89   :  { %70 = vst.msk [vmem:[#allocation0] sm:$0x1] %vm69_vm11, %v68_v22  }
  0x90   :  { %v75_v23 = vld [vmem:[#allocation0] sm:$0x1] }
  0x91   :  { %78 = vst [vmem:[%s162_s1] sm:$0x1] %v75_v23 }

// kernel: lenet5_forward.1
= control target key start
LH: loop header
LB: loop body
LE: loop exit
PB: predicated region body
PF: predicated region fallthrough
CT: control target
= control target key end

     0   :  { %10 = vsyncpa [#allocation3], 0  ;;  %s3652_s0 = inlined_call_operand.vmem [shape: f32[2,16,64], index: 0, kind: input, shape index: {}]   ;;  %s3653_s1 = inlined_call_operand.vmem [shape: f32[5,64,96], index: 1, kind: input, shape index: {}]   ;;  %s3654_s2 = inlined_call_operand.vmem [shape: f32[1,96], index: 2, kind: input, shape index: {}]   ;;  %s3655_s3 = inlined_call_operand.vmem [shape: f32[12,96,128], index: 3, kind: input, shape index: {}]   ;;  %s3656_s4 = inlined_call_operand.vmem [shape: f32[1,128], index: 4, kind: input, shape index: {}]   ;;  %s3657_s5 = inlined_call_operand.hbm [shape: f32[2,1,128], index: 5, kind: output, shape index: {}]  }
   0x1   :  { %12 = vsyncpa [#allocation3 + $0x1], 0  ;;  %s2780_s18 = smov 0   ;;  %s2782_s19 = smov 0  }
   0x2   :  { %s2784_s20 = smov 0   ;;  %s2786_s21 = smov 0  }
   0x3 LB: > { %s2801_s22 = sadd.s32 4294967295, %s2745_s21   ;;  %s1818_s23 = sadd.s32 4294967294, %s2745_s21   ;;  %s2745_s21 = sphi %s2786_s21, %s3663_s21   ;;  %s2741_s20 = sphi %s2784_s20, %s3662_s20   ;;  %s2737_s19 = sphi %s2782_s19, %s3661_s19   ;;  %s2733_s18 = sphi %s2780_s18, %s3660_s18  }
   0x4   : > { %s2805_s24 = sadd.s32 1, %s2745_s21   ;;  %s135_s25 = sadd.s32 1, %s2741_s20 }
   0x5   : > { %s132_s26 = ssub.s32 %s2745_s21, %s2805_s24  ;;  %p145_p0 = scmp.ne.s32.totalorder %s2741_s20, %s2737_s19 }
   0x6   : > { %p133_p1 = scmp.eq.s32.totalorder %s132_s26, 0  ;;  %p146_p2 = scmp.eq.s32.totalorder %s2801_s22, 1 }
   0x7   : > { %p151_p3 = scmp.ne.s32.totalorder %s2737_s19, %s2733_s18  ;;  %p152_p4 = scmp.eq.s32.totalorder %s1818_s23, 1 }
   0x8   : > { %s2816_s27 = scalar_select %p133_p1, %s2741_s20, %s135_s25  }
   0x9   : > { %p2818_p5 = por %p146_p2, %p145_p0  ;;  %p2822_p6 = por %p152_p4, %p151_p3 }
   0xa   : > { %p1821_p7 = scmp.ge.s32.totalorder %s2745_s21, 1  ;;  %p190_p8 = scmp.lt.s32.totalorder %s2745_s21, 3 }
   0xc   : > { %p191_p9 = pnand %p1821_p7, %p190_p8 }
   0xd   : > { %p217_p10 = scmp.lt.s32.totalorder (!%p191_p9), %s2801_s22, 1  ;;  %s2011_s23 = sshll.u32 (!%p191_p9), %s2801_s22, 4 }
   0xe   : > { %194 = sbr.rel (%p191_p9) target bundleno = 648 (0x288), region = 40  ;;  %s3617_s7 = scalar_lea.hbm (!%p191_p9), %s3657_s5, %s2011_s23 }
  0x13   : > { %v1831_v0 = vld [vmem:[%s3653_s1 + $0x78] sm:$0xff]  ;;  %v1830_v2 = vld [vmem:[%s3653_s1 + $0x70] sm:$0xff]  ;;  %v1829_v4 = vld [vmem:[%s3653_s1 + $0x68] sm:$0xff]  ;;  %s218_s17 = scalar_select %p217_p10, %s2801_s22, 1  ;;  %vm243_vm0 = vcmask 523264   ;;  %v2747_v50 = vmov 0.0  }
  0x14   : > { %v231_v1 = vld [vmem:[%s3653_s1 + $0x38] sm:$0xff]  ;;  %2221 = vmatprep.subr.mxu0 %v1831_v0  ;;  %v230_v3 = vld [vmem:[%s3653_s1 + $0x30] sm:$0xff]  ;;  %v229_v5 = vld [vmem:[%s3653_s1 + $0x28] sm:$0xff]  ;;  %vm2748_vm1 = vmmov 0   ;;  %vm726_vm2 = vcmask 785408  }
  0x15   : > { %2240 = vmatprep.subr.mxu1 %v231_v1  ;;  %2222 = vmatpush3.msra.mxu0 %v1831_v0  ;;  %v1828_v6 = vld [vmem:[%s3653_s1 + $0x60] sm:$0xff]  ;;  %v1827_v8 = vld [vmem:[%s3653_s1 + $0x58] sm:$0xff]  ;;  %s2014_s10 = sshll.u32 %s218_s17, 4  ;;  %v1826_v10 = vld [vmem:[%s3653_s1 + $0x50] sm:$0xff] }
  0x16   : > { %2241 = vmatpush3.msra.mxu1 %v231_v1  ;;  %2223 = vmatprep.subr.mxu0 %v1830_v2  ;;  %v228_v7 = vld [vmem:[%s3653_s1 + $0x20] sm:$0xff]  ;;  %v227_v9 = vld [vmem:[%s3653_s1 + $0x18] sm:$0xff]  ;;  %v226_v11 = vld [vmem:[%s3653_s1 + $0x10] sm:$0xff]  ;;  %s2875_s30 = scalar_lea.vmem %s3652_s0, %s2014_s10  ;;  %s2749_s10 = smov [#allocation2]  }
  0x17   : > { %2242 = vmatprep.subr.mxu1 %v230_v3  ;;  %2224 = vmatpush3.msra.mxu0 %v1830_v2  ;;  %v1825_v12 = vld [vmem:[%s3653_s1 + $0x48] sm:$0xff]  ;;  %v1824_v14 = vld [vmem:[%s3653_s1 + $0x40] sm:$0xff]  ;;  %v1843_v20 = vld [vmem:[%s3653_s1 + $0xb8] sm:$0xff]  ;;  %s2689_s11 = sshll.u32 %s2749_s10, 4  ;;  %s2690_s11 = int_to_ptr.vmem [resolvable:$false] %s2689_s11 }
  0x18   : > { %2243 = vmatpush3.msra.mxu1 %v230_v3  ;;  %2225 = vmatprep.subr.mxu0 %v1829_v4  ;;  %v225_v13 = vld [vmem:[%s3653_s1 + $0x8] sm:$0xff]  ;;  %v224_v15 = vld [vmem:[%s3653_s1] sm:$0xff]  ;;  %v1853_v21 = vld [vmem:[%s3653_s1 + $0xf8] sm:$0xff]  ;;  %s2691_s22 = scalar_lea.vmem %s2690_s11, 32 }
  0x19   : > { %2244 = vmatprep.subr.mxu1 %v229_v5  ;;  %2226 = vmatpush3.msra.mxu0 %v1829_v4  ;;  %v232_v16 = vld [vmem:[%s2875_s30 + $0x1] sm:$0xff]  ;;  %v233_v18 = vld [vmem:[%s2875_s30 + $0x9] sm:$0xf]  ;;  %v1842_v22 = vld [vmem:[%s3653_s1 + $0xb0] sm:$0xff] }
  0x1a   : > { %2245 = vmatpush3.msra.mxu1 %v229_v5  ;;  %2227 = vmatprep.subr.mxu0 %v1828_v6  ;;  %v222_v17 = vld [vmem:[%s2875_s30] sm:$0xff]  ;;  %v223_v19 = vld [vmem:[%s2875_s30 + $0x8] sm:$0xf]  ;;  %v1852_v23 = vld [vmem:[%s3653_s1 + $0xf0] sm:$0xff] }
  0x1b   : > { %2246 = vmatprep.subr.mxu1 %v228_v7  ;;  %2228 = vmatpush3.msra.mxu0 %v1828_v6  ;;  %v1841_v24 = vld [vmem:[%s3653_s1 + $0xa8] sm:$0xff]  ;;  %v1840_v26 = vld [vmem:[%s3653_s1 + $0xa0] sm:$0xff]  ;;  %v1839_v28 = vld [vmem:[%s3653_s1 + $0x98] sm:$0xff] }
  0x1c   : > { %2247 = vmatpush3.msra.mxu1 %v228_v7  ;;  %2229 = vmatprep.subr.mxu0 %v1827_v8  ;;  %v1851_v25 = vld [vmem:[%s3653_s1 + $0xe8] sm:$0xff]  ;;  %v1850_v27 = vld [vmem:[%s3653_s1 + $0xe0] sm:$0xff]  ;;  %v1849_v29 = vld [vmem:[%s3653_s1 + $0xd8] sm:$0xff] }
  0x1d   : > { %2248 = vmatprep.subr.mxu1 %v227_v9  ;;  %2230 = vmatpush3.msra.mxu0 %v1827_v8  ;;  %v1838_v30 = vld [vmem:[%s3653_s1 + $0x90] sm:$0xff]  ;;  %v1837_v32 = vld [vmem:[%s3653_s1 + $0x88] sm:$0xff]  ;;  %v1836_v35 = vld [vmem:[%s3653_s1 + $0x80] sm:$0xff] }
  0x1e   : > { %2249 = vmatpush3.msra.mxu1 %v227_v9  ;;  %2231 = vmatprep.subr.mxu0 %v1826_v10  ;;  %v1848_v31 = vld [vmem:[%s3653_s1 + $0xd0] sm:$0xff]  ;;  %v1847_v33 = vld [vmem:[%s3653_s1 + $0xc8] sm:$0xff]  ;;  %v1846_v36 = vld [vmem:[%s3653_s1 + $0xc0] sm:$0xff] }
  0x1f   : > { %2250 = vmatprep.subr.mxu1 %v226_v11  ;;  %2232 = vmatpush3.msra.mxu0 %v1826_v10  ;;  %v406_v34 = vld [vmem:[%s2875_s30 + $0x2] sm:$0xff]  ;;  %v407_v37 = vld [vmem:[%s2875_s30 + $0xa] sm:$0xf]  ;;  %v1863_v38 = vld [vmem:[%s3653_s1 + $0x138] sm:$0xff] }
  0x20   : > { %2251 = vmatpush3.msra.mxu1 %v226_v11  ;;  %2233 = vmatprep.subr.mxu0 %v1825_v12  ;;  %v500_v39 = vld [vmem:[%s2875_s30 + $0x3] sm:$0xff]  ;;  %v501_v40 = vld [vmem:[%s2875_s30 + $0xb] sm:$0xf]  ;;  %v1862_v41 = vld [vmem:[%s3653_s1 + $0x130] sm:$0xff] }
  0x21   : > { %2252 = vmatprep.subr.mxu1 %v225_v13  ;;  %2234 = vmatpush3.msra.mxu0 %v1825_v12  ;;  %v594_v42 = vld [vmem:[%s2875_s30 + $0x4] sm:$0xff]  ;;  %v1859_v45 = vld [vmem:[%s3653_s1 + $0x118] sm:$0xff]  ;;  %v1858_v46 = vld [vmem:[%s3653_s1 + $0x110] sm:$0xff] }
  0x22   : > { %2253 = vmatpush3.msra.mxu1 %v225_v13  ;;  %2235 = vmatprep.subr.mxu0 %v1824_v14  ;;  %v1861_v43 = vld [vmem:[%s3653_s1 + $0x128] sm:$0xff]  ;;  %v1860_v44 = vld [vmem:[%s3653_s1 + $0x120] sm:$0xff]  ;;  %v710_v51 = vld [vmem:[%s3655_s3 + $0x58] sm:$0xff] }
  0x23   : > { %2254 = vmatprep.subr.mxu1 %v224_v15  ;;  %2236 = vmatpush3.msra.mxu0 %v1824_v14  ;;  %v1857_v47 = vld [vmem:[%s3653_s1 + $0x108] sm:$0xff]  ;;  %v1856_v48 = vld [vmem:[%s3653_s1 + $0x100] sm:$0xff]  ;;  %v1878_v52 = vld [vmem:[%s3655_s3 + $0xb8] sm:$0xff] }
  0x24   : > { %2237 = vmatprep.mubr.msk.f32.mxu0 %vm243_vm0, %v232_v16  ;;  %2255 = vmatpush3.msra.mxu1 %v224_v15  ;;  %v595_v49 = vld [vmem:[%s2875_s30 + $0xc] sm:$0xf]  ;;  %v709_v53 = vld [vmem:[%s3655_s3 + $0x50] sm:$0xff]  ;;  %v707_v57 = vld [vmem:[%s3655_s3 + $0x40] sm:$0xff]  ;;  %s215_s30 = sand.u32 1, %s2737_s19  }
  0x25   : > { %2256 = vmatprep.mubr.msk.f32.mxu1 %vm243_vm0, %v222_v17  ;;  %2238 = vmatmul.mubr.msk.f32.vlgmr.msra.gmra.mxu0 %vm243_vm0, %v233_v18  ;;  %v1877_v54 = vld [vmem:[%s3655_s3 + $0xb0] sm:$0xff]  ;;  %v708_v55 = vld [vmem:[%s3655_s3 + $0x48] sm:$0xff]  ;;  %v1875_v58 = vld [vmem:[%s3655_s3 + $0xa0] sm:$0xff]  ;;  %s216_s17 = scalar_lea.vmem [#allocation2], %s215_s30  ;;  %s1751_s8 = scalar_lea.sflag [#allocation3], %s215_s30 }
  0x26   : > { %2257 = vmatmul.mubr.msk.f32.vlgmr.msra.gmra.mxu1 %vm243_vm0, %v223_v19  ;;  %2259 = vmatprep.subr.mxu0 %v1843_v20  ;;  %v1876_v56 = vld [vmem:[%s3655_s3 + $0xa8] sm:$0xff]  ;;  %v706_v59 = vld [vmem:[%s3655_s3 + $0x38] sm:$0xff]  ;;  %v705_v61 = vld [vmem:[%s3655_s3 + $0x30] sm:$0xff]  ;;  %s1763_s25 = sshll.u32 %s216_s17, 4  ;;  %s1764_s25 = int_to_ptr.vmem [resolvable:$true] %s1763_s25 }
  0x27   : > { %2278 = vmatprep.subr.mxu1 %v1853_v21  ;;  %2260 = vmatpush3.msra.mxu0 %v1843_v20  ;;  %v1874_v60 = vld [vmem:[%s3655_s3 + $0x98] sm:$0xff]  ;;  %v1873_v62 = vld [vmem:[%s3655_s3 + $0x90] sm:$0xff]  ;;  %v704_v63 = vld [vmem:[%s3655_s3 + $0x28] sm:$0xff]  ;;  %s2685_s9 = scalar_lea.vmem %s1764_s25, 16  ;;  %p2692_p0 = scmp.lt.s32.totalorder %s1764_s25, %s2690_s11 }
  0x28   : > { %2279 = vmatpush3.msra.mxu1 %v1853_v21  ;;  %2261 = vmatprep.subr.mxu0 %v1842_v22  ;;  %v1872_v0 = vld [vmem:[%s3655_s3 + $0x88] sm:$0xff]  ;;  %v703_v1 = vld [vmem:[%s3655_s3 + $0x20] sm:$0xff]  ;;  %v702_v3 = vld [vmem:[%s3655_s3 + $0x18] sm:$0xff]  ;;  %p2686_p11 = scmp.ne.s32.totalorder %s1764_s25, %s2685_s9  ;;  %p2693_p1 = scmp.lt.s32.totalorder %s2691_s22, %s2685_s9 }
  0x29   : > { %2280 = vmatprep.subr.mxu1 %v1852_v23  ;;  %2262 = vmatpush3.msra.mxu0 %v1842_v22  ;;  %v1871_v2 = vld [vmem:[%s3655_s3 + $0x80] sm:$0xff]  ;;  %v1870_v4 = vld [vmem:[%s3655_s3 + $0x78] sm:$0xff]  ;;  %v701_v5 = vld [vmem:[%s3655_s3 + $0x10] sm:$0xff] }
  0x2a   : > { %2281 = vmatpush3.msra.mxu1 %v1852_v23  ;;  %2263 = vmatprep.subr.mxu0 %v1841_v24  ;;  %v1869_v6 = vld [vmem:[%s3655_s3 + $0x70] sm:$0xff]  ;;  %v700_v7 = vld [vmem:[%s3655_s3 + $0x8] sm:$0xff]  ;;  %v699_v9 = vld [vmem:[%s3655_s3] sm:$0xff]  ;;  %p2687_p12 = pnand %p2686_p11, %p2818_p5  ;;  %p2694_p2 = por %p2693_p1, %p2692_p0 }
  0x2b   : > { %2282 = vmatprep.subr.mxu1 %v1851_v25  ;;  %2264 = vmatpush3.msra.mxu0 %v1841_v24  ;;  %v1868_v8 = vld [vmem:[%s3655_s3 + $0x68] sm:$0xff]  ;;  %v1867_v10 = vld [vmem:[%s3655_s3 + $0x60] sm:$0xff] }
  0x2c   : > { %2283 = vmatpush3.msra.mxu1 %v1851_v25  ;;  %2265 = vmatprep.subr.mxu0 %v1840_v26  ;;  %v1866_v25 = vld [vmem:[%s3654_s2] ss:$0 sm:$0xff]  ;;  %p2688_p13 = pneg %p2687_p12 }
  0x2d   : > { %2284 = vmatprep.subr.mxu1 %v1850_v27  ;;  %2266 = vmatpush3.msra.mxu0 %v1840_v26 }
  0x2e   : > { %2285 = vmatpush3.msra.mxu1 %v1850_v27  ;;  %2267 = vmatprep.subr.mxu0 %v1839_v28  ;;  %p2695_p3 = pnand %p2694_p2, %p2688_p13 }
  0x2f   : > { %2286 = vmatprep.subr.mxu1 %v1849_v29  ;;  %2268 = vmatpush3.msra.mxu0 %v1839_v28 }
  0x30   : > { %2287 = vmatpush3.msra.mxu1 %v1849_v29  ;;  %2269 = vmatprep.subr.mxu0 %v1838_v30 }
  0x31   : > { %2288 = vmatprep.subr.mxu1 %v1848_v31  ;;  %2270 = vmatpush3.msra.mxu0 %v1838_v30 }
  0x32   : > { %2289 = vmatpush3.msra.mxu1 %v1848_v31  ;;  %2271 = vmatprep.subr.mxu0 %v1837_v32 }
  0x33   : > { %2290 = vmatprep.subr.mxu1 %v1847_v33  ;;  %2272 = vmatpush3.msra.mxu0 %v1837_v32 }
  0x34   : > { %2275 = vmatprep.mubr.msk.f32.mxu0 %vm243_vm0, %v406_v34  ;;  %2273 = vmatprep.subr.mxu0 %v1836_v35 }
  0x35   : > { %2291 = vmatpush3.msra.mxu1 %v1847_v33  ;;  %2274 = vmatpush3.msra.mxu0 %v1836_v35  ;;  %v1905_v33 = vld [vmem:[%s3655_s3 + $0x178] sm:$0xff] }
  0x36   : > { %2292 = vmatprep.subr.mxu1 %v1846_v36  ;;  %2276 = vmatmul.mubr.msk.f32.vlgmr.msra.gmra.mxu0 %vm243_vm0, %v407_v37  ;;  %v1892_v35 = vld [vmem:[%s3655_s3 + $0x118] sm:$0xff]  ;;  %v1891_v37 = vld [vmem:[%s3655_s3 + $0x110] sm:$0xff] }
  0x37   : > { %2297 = vmatprep.subr.mxu0 %v1863_v38  ;;  %2293 = vmatpush3.msra.mxu1 %v1846_v36  ;;  %v1904_v36 = vld [vmem:[%s3655_s3 + $0x170] sm:$0xff] }
  0x38   : > { %2294 = vmatprep.mubr.msk.f32.mxu1 %vm243_vm0, %v500_v39  ;;  %2298 = vmatpush3.msra.mxu0 %v1863_v38  ;;  %v1903_v38 = vld [vmem:[%s3655_s3 + $0x168] sm:$0xff] }
  0x39   : > { %2295 = vmatmul.mubr.msk.f32.vlgmr.msra.gmra.mxu1 %vm243_vm0, %v501_v40  ;;  %2299 = vmatprep.subr.mxu0 %v1862_v41  ;;  %v1890_v39 = vld [vmem:[%s3655_s3 + $0x108] sm:$0xff]  ;;  %v1902_v40 = vld [vmem:[%s3655_s3 + $0x160] sm:$0xff] }
  0x3a   : > { %2313 = vmatprep.mubr.msk.f32.mxu0 %vm243_vm0, %v594_v42  ;;  %2300 = vmatpush3.msra.mxu0 %v1862_v41  ;;  %v1889_v41 = vld [vmem:[%s3655_s3 + $0x100] sm:$0xff]  ;;  %v1901_v42 = vld [vmem:[%s3655_s3 + $0x158] sm:$0xff] }
  0x3b   : > { %2301 = vmatprep.subr.mxu0 %v1861_v43  ;;  %2316 = vmatprep.subr.mxu1 %v2747_v50 }
  0x3c   : > { %2302 = vmatpush3.msra.mxu0 %v1861_v43  ;;  %2317 = vmatpush3.msra.mxu1 %v1878_v52  ;;  %v1888_v43 = vld [vmem:[%s3655_s3 + $0xf8] sm:$0xff] }
  0x3d   : > { %2303 = vmatprep.subr.mxu0 %v1860_v44  ;;  %2318 = vmatprep.subr.mxu1 %v2747_v50  ;;  %v1884_v52 = vld [vmem:[%s3655_s3 + $0xd8] sm:$0xff] }
  0x3e   : > { %2304 = vmatpush3.msra.mxu0 %v1860_v44  ;;  %2319 = vmatpush3.msra.mxu1 %v1877_v54  ;;  %v1900_v44 = vld [vmem:[%s3655_s3 + $0x150] sm:$0xff] }
  0x3f   : > { %2305 = vmatprep.subr.mxu0 %v1859_v45  ;;  %2320 = vmatprep.subr.mxu1 %v2747_v50  ;;  %v1883_v54 = vld [vmem:[%s3655_s3 + $0xd0] sm:$0xff] }
  0x40   : > { %2306 = vmatpush3.msra.mxu0 %v1859_v45  ;;  %2321 = vmatpush3.msra.mxu1 %v1876_v56  ;;  %v1887_v45 = vld [vmem:[%s3655_s3 + $0xf0] sm:$0xff]  ;;  %v1882_v56 = vld [vmem:[%s3655_s3 + $0xc8] sm:$0xff] }
  0x41   : > { %2307 = vmatprep.subr.mxu0 %v1858_v46  ;;  %2322 = vmatprep.subr.mxu1 %v2747_v50 }
  0x42   : > { %2308 = vmatpush3.msra.mxu0 %v1858_v46  ;;  %2323 = vmatpush3.msra.mxu1 %v1875_v58  ;;  %v1899_v46 = vld [vmem:[%s3655_s3 + $0x148] sm:$0xff] }
  0x43   : > { %2309 = vmatprep.subr.mxu0 %v1857_v47  ;;  %2324 = vmatprep.subr.mxu1 %v2747_v50 }
  0x44   : > { %2310 = vmatpush3.msra.mxu0 %v1857_v47  ;;  %2325 = vmatpush3.msra.mxu1 %v1874_v60  ;;  %v1886_v47 = vld [vmem:[%s3655_s3 + $0xe8] sm:$0xff]  ;;  %v1931_v60 = vld [vmem:[%s3655_s3 + $0x238] sm:$0xff] }
  0x45   : > { %2311 = vmatprep.subr.mxu0 %v1856_v48  ;;  %2326 = vmatprep.subr.mxu1 %v2747_v50 }
  0x46   : > { %2312 = vmatpush3.msra.mxu0 %v1856_v48  ;;  %2327 = vmatpush3.msra.mxu1 %v1873_v62  ;;  %v1898_v48 = vld [vmem:[%s3655_s3 + $0x140] sm:$0xff]  ;;  %v1918_v62 = vld [vmem:[%s3655_s3 + $0x1d8] sm:$0xff] }
  0x47   : > { %2314 = vmatmul.mubr.msk.f32.vlgmr.msra.gmra.mxu0 %vm243_vm0, %v595_v49  ;;  %2343 = vmatprep.subr.mxu0 %v2747_v50  ;;  %v1885_v49 = vld [vmem:[%s3655_s3 + $0xe0] sm:$0xff] }
  0x48   : > { %2344 = vmatpush3.msra.mxu0 %v710_v51  ;;  %2328 = vmatprep.subr.mxu1 %v2747_v50  ;;  %v1897_v51 = vld [vmem:[%s3655_s3 + $0x138] sm:$0xff] }
  0x49   : > { %2345 = vmatprep.subr.mxu0 %v2747_v50  ;;  %2329 = vmatpush3.msra.mxu1 %v1872_v0  ;;  %v1917_v0 = vld [vmem:[%s3655_s3 + $0x1d0] sm:$0xff] }
  0x4a   : > { %2346 = vmatpush3.msra.mxu0 %v709_v53  ;;  %2330 = vmatprep.subr.mxu1 %v2747_v50  ;;  %v1896_v53 = vld [vmem:[%s3655_s3 + $0x130] sm:$0xff] }
  0x4b   : > { %2347 = vmatprep.subr.mxu0 %v2747_v50  ;;  %2331 = vmatpush3.msra.mxu1 %v1871_v2  ;;  %v1916_v2 = vld [vmem:[%s3655_s3 + $0x1c8] sm:$0xff] }
  0x4c   : > { %2348 = vmatpush3.msra.mxu0 %v708_v55  ;;  %2332 = vmatprep.subr.mxu1 %v2747_v50  ;;  %v1895_v55 = vld [vmem:[%s3655_s3 + $0x128] sm:$0xff] }
  0x4d   : > { %2349 = vmatprep.subr.mxu0 %v2747_v50  ;;  %2333 = vmatpush3.msra.mxu1 %v1870_v4  ;;  %v1915_v4 = vld [vmem:[%s3655_s3 + $0x1c0] sm:$0xff] }
  0x4e   : > { %2350 = vmatpush3.msra.mxu0 %v707_v57  ;;  %2334 = vmatprep.subr.mxu1 %v2747_v50  ;;  %v1894_v57 = vld [vmem:[%s3655_s3 + $0x120] sm:$0xff] }
  0x4f   : > { %2351 = vmatprep.subr.mxu0 %v2747_v50  ;;  %2335 = vmatpush3.msra.mxu1 %v1869_v6  ;;  %v1914_v6 = vld [vmem:[%s3655_s3 + $0x1b8] sm:$0xff] }
  0x50   : > { %2352 = vmatpush3.msra.mxu0 %v706_v59  ;;  %2336 = vmatprep.subr.mxu1 %v2747_v50  ;;  %v1881_v59 = vld [vmem:[%s3655_s3 + $0xc0] sm:$0xff] }
  0x51   : > { %2353 = vmatprep.subr.mxu0 %v2747_v50  ;;  %2337 = vmatpush3.msra.mxu1 %v1868_v8  ;;  %v1913_v8 = vld [vmem:[%s3655_s3 + $0x1b0] sm:$0xff] }
  0x52   : > { %2354 = vmatpush3.msra.mxu0 %v705_v61  ;;  %2338 = vmatprep.subr.mxu1 %v2747_v50 }
  0x53   : > { %2355 = vmatprep.subr.mxu0 %v2747_v50  ;;  %2367 = vmatprep.mubr.msk.f32.mxu0 %vm2748_vm1, %v2747_v50 }
  0x54   : > { %2356 = vmatpush3.msra.mxu0 %v704_v63  ;;  %2339 = vmatpush3.msra.mxu1 %v1867_v10  ;;  %v1930_v63 = vld [vmem:[%s3655_s3 + $0x230] sm:$0xff]  ;;  %v1912_v10 = vld [vmem:[%s3655_s3 + $0x1a8] sm:$0xff] }
  0x55   : > { %2357 = vmatprep.subr.mxu0 %v2747_v50  ;;  %2340 = vmatprep.mubr.msk.f32.mxu1 %vm2748_vm1, %v2747_v50 }
  0x56   : > { %2358 = vmatpush3.msra.mxu0 %v703_v1  ;;  %2370 = vmatprep.subr.mxu1 %v2747_v50  ;;  %v1929_v1 = vld [vmem:[%s3655_s3 + $0x228] sm:$0xff] }
  0x57   : > { %2359 = vmatprep.subr.mxu0 %v2747_v50 }
  0x58   : > { %2360 = vmatpush3.msra.mxu0 %v702_v3  ;;  %v1928_v3 = vld [vmem:[%s3655_s3 + $0x220] sm:$0xff] }
  0x59   : > { %2361 = vmatprep.subr.mxu0 %v2747_v50 }
  0x5a   : > { %2362 = vmatpush3.msra.mxu0 %v701_v5  ;;  %v1927_v5 = vld [vmem:[%s3655_s3 + $0x218] sm:$0xff] }
  0x5b   : > { %2363 = vmatprep.subr.mxu0 %v2747_v50 }
  0x5c   : > { %2364 = vmatpush3.msra.mxu0 %v700_v7  ;;  %v1926_v7 = vld [vmem:[%s3655_s3 + $0x210] sm:$0xff] }
  0x5d   : > { %2365 = vmatprep.subr.mxu0 %v2747_v50 }
  0x5e   : > { %2366 = vmatpush3.msra.mxu0 %v699_v9  ;;  %v1925_v9 = vld [vmem:[%s3655_s3 + $0x208] sm:$0xff] }
  0x5f   : > { %2397 = vmatprep.subr.mxu0 %v2747_v50 }
  0xe5   : > { %v2239_v11 = vpop.f32.mrf.mxu0 }
  0xe6   : > { %v2258_v12 = vpop.f32.mrf.mxu1 }
  0xe7   : > { %v403_v13 = vadd.f32 %v2258_v12, %v2239_v11  ;;  %v316_v14 = vpop.f32.mrf.mxu0  ;;  %v1924_v11 = vld [vmem:[%s3655_s3 + $0x200] sm:$0xff] }
  0xe8   : > { %v397_v15 = vpop.f32.mrf.mxu1  ;;  %v1911_v12 = vld [vmem:[%s3655_s3 + $0x1a0] sm:$0xff] }
  0xe9   : > { %v398_v21 = vadd.f32 %v397_v15, %v316_v14  ;;  %v1910_v14 = vld [vmem:[%s3655_s3 + $0x198] sm:$0xff]  ;;  %v1922_v15 = vld [vmem:[%s3655_s3 + $0x1f0] sm:$0xff] }
  0xf6   : > { %v2277_v16 = vpop.f32.mrf.mxu0 }
  0xf7   : > { %v499_v17 = vadd.f32 %v2277_v16, %v403_v13  ;;  %v1923_v13 = vld [vmem:[%s3655_s3 + $0x1f8] sm:$0xff]  ;;  %v1909_v16 = vld [vmem:[%s3655_s3 + $0x190] sm:$0xff] }
  0xf8   : > { %v489_v20 = vpop.f32.mrf.mxu0 }
  0xf9   : > { %v2296_v18 = vpop.f32.mrf.mxu1  ;;  %v498_v22 = vadd.f32 %v489_v20, %v398_v21  ;;  %v1907_v21 = vld [vmem:[%s3655_s3 + $0x180] sm:$0xff] }
  0xfa   : > { %v593_v19 = vadd.f32 %v2296_v18, %v499_v17  ;;  %v1921_v17 = vld [vmem:[%s3655_s3 + $0x1e8] sm:$0xff] }
  0xfb   : > { %v583_v23 = vpop.f32.mrf.mxu1  ;;  %v1908_v18 = vld [vmem:[%s3655_s3 + $0x188] sm:$0xff] }
  0xfc   : > { %v592_v26 = vadd.f32 %v583_v23, %v498_v22  ;;  %v1957_v22 = vld [vmem:[%s3655_s3 + $0x2f8] sm:$0xff] }
 0x107   : > { %v2315_v24 = vpop.f32.mrf.mxu0 }
 0x108   : > { %v687_v27 = vadd.f32 %v2315_v24, %v593_v19  ;;  %v1920_v19 = vld [vmem:[%s3655_s3 + $0x1e0] sm:$0xff]  ;;  %v1944_v24 = vld [vmem:[%s3655_s3 + $0x298] sm:$0xff] }
 0x109   : > { %v677_v28 = vpop.f32.mrf.mxu0 }
 0x10a   : > { %v3080_v29 = vadd.f32 %v1866_v25, %v687_v27  ;;  %v686_v30 = vadd.f32 %v677_v28, %v592_v26  ;;  %v1943_v26 = vld [vmem:[%s3655_s3 + $0x290] sm:$0xff]  ;;  %v1955_v27 = vld [vmem:[%s3655_s3 + $0x2e8] sm:$0xff] }
 0x10b   : > { %v1942_v28 = vld [vmem:[%s3655_s3 + $0x288] sm:$0xff] }
 0x10c   : > { %v695_v31 = vadd.f32 %v1866_v25, %v686_v30  ;;  %v1956_v25 = vld [vmem:[%s3655_s3 + $0x2f0] sm:$0xff]  ;;  %v1954_v30 = vld [vmem:[%s3655_s3 + $0x2e0] sm:$0xff] }
 0x10e   : > { %v3082_v32 = vmax.f32 %v695_v31, 0.0  ;;  %v1941_v31 = vld [vmem:[%s3655_s3 + $0x280] sm:$0xff] }
 0x110   : > { %2368 = vmatmul.mubr.msk.f32.vlgmr.msra.gmra.mxu0 %vm726_vm2, %v3082_v32  ;;  %v725_v34 = vrot.slane %v3082_v32, 1  ;;  %v971_v58 = vrot.slane %v3082_v32, 3  ;;  %v884_v61 = vrot.slane %v3082_v32, 2  ;;  %v1145_v20 = vrot.slane %v3082_v32, 5 }
 0x111   : > { %2398 = vmatpush3.msra.mxu0 %v1905_v33  ;;  %2421 = vmatprep.mubr.msk.f32.mxu0 %vm2748_vm1, %v2747_v50  ;;  %v1058_v23 = vrot.slane %v3082_v32, 4  ;;  %v1953_v33 = vld [vmem:[%s3655_s3 + $0x2d8] sm:$0xff] }
 0x112   : > { %2399 = vmatprep.subr.mxu0 %v2747_v50  ;;  %2341 = vmatmul.mubr.msk.f32.vlgmr.msra.gmra.mxu1 %vm726_vm2, %v725_v34  ;;  %v1940_v34 = vld [vmem:[%s3655_s3 + $0x278] sm:$0xff] }
 0x113   : > { %2371 = vmatpush3.msra.mxu1 %v1892_v35  ;;  %2400 = vmatpush3.msra.mxu0 %v1904_v36  ;;  %v1952_v35 = vld [vmem:[%s3655_s3 + $0x2d0] sm:$0xff] }
 0x114   : > { %2372 = vmatprep.subr.mxu1 %v2747_v50  ;;  %2401 = vmatprep.subr.mxu0 %v2747_v50  ;;  %v1939_v36 = vld [vmem:[%s3655_s3 + $0x270] sm:$0xff] }
 0x115   : > { %2373 = vmatpush3.msra.mxu1 %v1891_v37  ;;  %2402 = vmatpush3.msra.mxu0 %v1903_v38  ;;  %v1951_v37 = vld [vmem:[%s3655_s3 + $0x2c8] sm:$0xff] }
 0x116   : > { %2374 = vmatprep.subr.mxu1 %v2747_v50  ;;  %2403 = vmatprep.subr.mxu0 %v2747_v50  ;;  %v1938_v38 = vld [vmem:[%s3655_s3 + $0x268] sm:$0xff] }
 0x117   : > { %2375 = vmatpush3.msra.mxu1 %v1890_v39  ;;  %2404 = vmatpush3.msra.mxu0 %v1902_v40  ;;  %v1950_v39 = vld [vmem:[%s3655_s3 + $0x2c0] sm:$0xff] }
 0x118   : > { %2376 = vmatprep.subr.mxu1 %v2747_v50  ;;  %2405 = vmatprep.subr.mxu0 %v2747_v50  ;;  %v1937_v40 = vld [vmem:[%s3655_s3 + $0x260] sm:$0xff] }
 0x119   : > { %2377 = vmatpush3.msra.mxu1 %v1889_v41  ;;  %2406 = vmatpush3.msra.mxu0 %v1901_v42  ;;  %v1949_v41 = vld [vmem:[%s3655_s3 + $0x2b8] sm:$0xff] }
 0x11a   : > { %2378 = vmatprep.subr.mxu1 %v2747_v50  ;;  %2407 = vmatprep.subr.mxu0 %v2747_v50  ;;  %v1936_v42 = vld [vmem:[%s3655_s3 + $0x258] sm:$0xff] }
 0x11b   : > { %2379 = vmatpush3.msra.mxu1 %v1888_v43  ;;  %2408 = vmatpush3.msra.mxu0 %v1900_v44  ;;  %v1948_v43 = vld [vmem:[%s3655_s3 + $0x2b0] sm:$0xff] }
 0x11c   : > { %2380 = vmatprep.subr.mxu1 %v2747_v50  ;;  %2409 = vmatprep.subr.mxu0 %v2747_v50  ;;  %v1935_v44 = vld [vmem:[%s3655_s3 + $0x250] sm:$0xff] }
 0x11d   : > { %2381 = vmatpush3.msra.mxu1 %v1887_v45  ;;  %2410 = vmatpush3.msra.mxu0 %v1899_v46  ;;  %v1947_v45 = vld [vmem:[%s3655_s3 + $0x2a8] sm:$0xff] }
 0x11e   : > { %2382 = vmatprep.subr.mxu1 %v2747_v50  ;;  %2411 = vmatprep.subr.mxu0 %v2747_v50  ;;  %v1934_v46 = vld [vmem:[%s3655_s3 + $0x248] sm:$0xff] }
 0x11f   : > { %2383 = vmatpush3.msra.mxu1 %v1886_v47  ;;  %2412 = vmatpush3.msra.mxu0 %v1898_v48  ;;  %v1946_v47 = vld [vmem:[%s3655_s3 + $0x2a0] sm:$0xff]  ;;  %v1319_v48 = vrot.slane %v3082_v32, 7 }
 0x120   : > { %2384 = vmatprep.subr.mxu1 %v2747_v50  ;;  %2413 = vmatprep.subr.mxu0 %v2747_v50 }
 0x121   : > { %2385 = vmatpush3.msra.mxu1 %v1885_v49  ;;  %2414 = vmatpush3.msra.mxu0 %v1897_v51  ;;  %v1933_v49 = vld [vmem:[%s3655_s3 + $0x240] sm:$0xff]  ;;  %v1983_v51 = vld [vmem:[%s3655_s3 + $0x3b8] sm:$0xff] }
 0x122   : > { %2386 = vmatprep.subr.mxu1 %v2747_v50  ;;  %2415 = vmatprep.subr.mxu0 %v2747_v50 }
 0x123   : > { %2387 = vmatpush3.msra.mxu1 %v1884_v52  ;;  %2416 = vmatpush3.msra.mxu0 %v1896_v53  ;;  %v1232_v52 = vrot.slane %v3082_v32, 6  ;;  %v1970_v53 = vld [vmem:[%s3655_s3 + $0x358] sm:$0xff]  ;;  %v1969_v32 = vld [vmem:[%s3655_s3 + $0x350] sm:$0xff] }
 0x124   : > { %2388 = vmatprep.subr.mxu1 %v2747_v50  ;;  %2417 = vmatprep.subr.mxu0 %v2747_v50 }
 0x125   : > { %2389 = vmatpush3.msra.mxu1 %v1883_v54  ;;  %2418 = vmatpush3.msra.mxu0 %v1895_v55  ;;  %v1982_v54 = vld [vmem:[%s3655_s3 + $0x3b0] sm:$0xff]  ;;  %v1981_v55 = vld [vmem:[%s3655_s3 + $0x3a8] sm:$0xff] }
 0x126   : > { %2390 = vmatprep.subr.mxu1 %v2747_v50  ;;  %2419 = vmatprep.subr.mxu0 %v2747_v50 }
 0x127   : > { %2391 = vmatpush3.msra.mxu1 %v1882_v56  ;;  %2420 = vmatpush3.msra.mxu0 %v1894_v57  ;;  %v1968_v56 = vld [vmem:[%s3655_s3 + $0x348] sm:$0xff]  ;;  %v1980_v57 = vld [vmem:[%s3655_s3 + $0x3a0] sm:$0xff] }
 0x128   : > { %2392 = vmatprep.subr.mxu1 %v2747_v50  ;;  %2422 = vmatmul.mubr.msk.f32.vlgmr.msra.gmra.mxu0 %vm726_vm2, %v971_v58  ;;  %v1967_v58 = vld [vmem:[%s3655_s3 + $0x340] sm:$0xff] }
 0x129   : > { %2451 = vmatprep.subr.mxu0 %v2747_v50  ;;  %2393 = vmatpush3.msra.mxu1 %v1881_v59  ;;  %v1979_v59 = vld [vmem:[%s3655_s3 + $0x398] sm:$0xff] }
 0x12a   : > { %2394 = vmatprep.mubr.msk.f32.mxu1 %vm2748_vm1, %v2747_v50  ;;  %2452 = vmatpush3.msra.mxu0 %v1931_v60  ;;  %v1966_v60 = vld [vmem:[%s3655_s3 + $0x338] sm:$0xff] }
 0x12b   : > { %2395 = vmatmul.mubr.msk.f32.vlgmr.msra.gmra.mxu1 %vm726_vm2, %v884_v61  ;;  %2424 = vmatprep.subr.mxu1 %v2747_v50  ;;  %v1978_v61 = vld [vmem:[%s3655_s3 + $0x390] sm:$0xff] }
 0x12c   : > { %2453 = vmatprep.subr.mxu0 %v2747_v50  ;;  %2425 = vmatpush3.msra.mxu1 %v1918_v62  ;;  %v1965_v62 = vld [vmem:[%s3655_s3 + $0x330] sm:$0xff] }
 0x12d   : > { %2454 = vmatpush3.msra.mxu0 %v1930_v63  ;;  %2426 = vmatprep.subr.mxu1 %v2747_v50  ;;  %v1977_v63 = vld [vmem:[%s3655_s3 + $0x388] sm:$0xff] }
 0x12e   : > { %2455 = vmatprep.subr.mxu0 %v2747_v50  ;;  %2427 = vmatpush3.msra.mxu1 %v1917_v0  ;;  %v1964_v0 = vld [vmem:[%s3655_s3 + $0x328] sm:$0xff] }
 0x12f   : > { %2456 = vmatpush3.msra.mxu0 %v1929_v1  ;;  %2428 = vmatprep.subr.mxu1 %v2747_v50  ;;  %v1976_v1 = vld [vmem:[%s3655_s3 + $0x380] sm:$0xff] }
 0x130   : > { %2457 = vmatprep.subr.mxu0 %v2747_v50  ;;  %2429 = vmatpush3.msra.mxu1 %v1916_v2  ;;  %v1963_v2 = vld [vmem:[%s3655_s3 + $0x320] sm:$0xff] }
 0x131   : > { %2458 = vmatpush3.msra.mxu0 %v1928_v3  ;;  %2430 = vmatprep.subr.mxu1 %v2747_v50  ;;  %v1975_v3 = vld [vmem:[%s3655_s3 + $0x378] sm:$0xff] }
 0x132   : > { %2459 = vmatprep.subr.mxu0 %v2747_v50  ;;  %2431 = vmatpush3.msra.mxu1 %v1915_v4  ;;  %v1962_v4 = vld [vmem:[%s3655_s3 + $0x318] sm:$0xff] }
 0x133   : > { %2460 = vmatpush3.msra.mxu0 %v1927_v5  ;;  %2432 = vmatprep.subr.mxu1 %v2747_v50  ;;  %v1974_v5 = vld [vmem:[%s3655_s3 + $0x370] sm:$0xff] }
 0x134   : > { %2461 = vmatprep.subr.mxu0 %v2747_v50  ;;  %2433 = vmatpush3.msra.mxu1 %v1914_v6  ;;  %v1961_v6 = vld [vmem:[%s3655_s3 + $0x310] sm:$0xff] }
 0x135   : > { %2462 = vmatpush3.msra.mxu0 %v1926_v7  ;;  %2434 = vmatprep.subr.mxu1 %v2747_v50  ;;  %v3477_v7 = vmax.f32 %v3080_v29, 0.0  ;;  %v1972_v29 = vld [vmem:[%s3655_s3 + $0x360] sm:$0xff] }
 0x136   : > { %2463 = vmatprep.subr.mxu0 %v2747_v50  ;;  %2435 = vmatpush3.msra.mxu1 %v1913_v8  ;;  %v1973_v8 = vld [vmem:[%s3655_s3 + $0x368] sm:$0xff] }
 0x137   : > { %2464 = vmatpush3.msra.mxu0 %v1925_v9  ;;  %2436 = vmatprep.subr.mxu1 %v2747_v50  ;;  %v1960_v9 = vld [vmem:[%s3655_s3 + $0x308] sm:$0xff] }
 0x138   : > { %2465 = vmatprep.subr.mxu0 %v2747_v50  ;;  %2437 = vmatpush3.msra.mxu1 %v1912_v10  ;;  %v1493_v10 = vrot.slane %v3477_v7, 1 }
 0x139   : > { %2466 = vmatpush3.msra.mxu0 %v1924_v11  ;;  %2438 = vmatprep.subr.mxu1 %v2747_v50  ;;  %v1959_v11 = vld [vmem:[%s3655_s3 + $0x300] sm:$0xff] }
 0x13a   : > { %2467 = vmatprep.subr.mxu0 %v2747_v50  ;;  %2439 = vmatpush3.msra.mxu1 %v1911_v12  ;;  %v2009_v12 = vld [vmem:[%s3655_s3 + $0x478] sm:$0xff] }
 0x13b   : > { %2468 = vmatpush3.msra.mxu0 %v1923_v13  ;;  %2440 = vmatprep.subr.mxu1 %v2747_v50  ;;  %v1996_v13 = vld [vmem:[%s3655_s3 + $0x418] sm:$0xff] }
 0x13c   : > { %2469 = vmatprep.subr.mxu0 %v2747_v50  ;;  %2441 = vmatpush3.msra.mxu1 %v1910_v14  ;;  %v2008_v14 = vld [vmem:[%s3655_s3 + $0x470] sm:$0xff] }
 0x13d   : > { %2470 = vmatpush3.msra.mxu0 %v1922_v15  ;;  %2442 = vmatprep.subr.mxu1 %v2747_v50  ;;  %v1995_v15 = vld [vmem:[%s3655_s3 + $0x410] sm:$0xff] }
 0x13e   : > { %2471 = vmatprep.subr.mxu0 %v2747_v50  ;;  %2443 = vmatpush3.msra.mxu1 %v1909_v16  ;;  %v2007_v16 = vld [vmem:[%s3655_s3 + $0x468] sm:$0xff] }
 0x13f   : > { %2472 = vmatpush3.msra.mxu0 %v1921_v17  ;;  %2444 = vmatprep.subr.mxu1 %v2747_v50  ;;  %v1994_v17 = vld [vmem:[%s3655_s3 + $0x408] sm:$0xff] }
 0x140   : > { %2473 = vmatprep.subr.mxu0 %v2747_v50  ;;  %2445 = vmatpush3.msra.mxu1 %v1908_v18  ;;  %v2006_v18 = vld [vmem:[%s3655_s3 + $0x460] sm:$0xff] }
 0x141   : > { %2474 = vmatpush3.msra.mxu0 %v1920_v19  ;;  %2475 = vmatprep.mubr.msk.f32.mxu0 %vm2748_vm1, %v2747_v50  ;;  %v1993_v19 = vld [vmem:[%s3655_s3 + $0x400] sm:$0xff] }
 0x142   : > { %2446 = vmatprep.subr.mxu1 %v2747_v50  ;;  %2476 = vmatmul.mubr.msk.f32.vlgmr.msra.gmra.mxu0 %vm726_vm2, %v1145_v20  ;;  %v2005_v20 = vld [vmem:[%s3655_s3 + $0x458] sm:$0xff] }
 0x143   : > { %2505 = vmatprep.subr.mxu0 %v2747_v50  ;;  %2447 = vmatpush3.msra.mxu1 %v1907_v21  ;;  %v1992_v21 = vld [vmem:[%s3655_s3 + $0x3f8] sm:$0xff] }
 0x144   : > { %2448 = vmatprep.mubr.msk.f32.mxu1 %vm2748_vm1, %v2747_v50  ;;  %2506 = vmatpush3.msra.mxu0 %v1957_v22  ;;  %v2004_v22 = vld [vmem:[%s3655_s3 + $0x450] sm:$0xff] }
 0x145   : > { %2449 = vmatmul.mubr.msk.f32.vlgmr.msra.gmra.mxu1 %vm726_vm2, %v1058_v23  ;;  %2478 = vmatprep.subr.mxu1 %v2747_v50  ;;  %v1991_v23 = vld [vmem:[%s3655_s3 + $0x3f0] sm:$0xff] }
 0x146   : > { %2507 = vmatprep.subr.mxu0 %v2747_v50  ;;  %2479 = vmatpush3.msra.mxu1 %v1944_v24  ;;  %v2003_v24 = vld [vmem:[%s3655_s3 + $0x448] sm:$0xff] }
 0x147   : > { %2508 = vmatpush3.msra.mxu0 %v1956_v25  ;;  %2480 = vmatprep.subr.mxu1 %v2747_v50  ;;  %v1990_v25 = vld [vmem:[%s3655_s3 + $0x3e8] sm:$0xff] }
 0x148   : > { %2509 = vmatprep.subr.mxu0 %v2747_v50  ;;  %2481 = vmatpush3.msra.mxu1 %v1943_v26  ;;  %v2002_v26 = vld [vmem:[%s3655_s3 + $0x440] sm:$0xff] }
 0x149   : > { %2510 = vmatpush3.msra.mxu0 %v1955_v27  ;;  %2482 = vmatprep.subr.mxu1 %v2747_v50  ;;  %v1989_v27 = vld [vmem:[%s3655_s3 + $0x3e0] sm:$0xff] }
 0x14a   : > { %2511 = vmatprep.subr.mxu0 %v2747_v50  ;;  %2483 = vmatpush3.msra.mxu1 %v1942_v28  ;;  %v2001_v28 = vld [vmem:[%s3655_s3 + $0x438] sm:$0xff] }
 0x14b   : > { %2512 = vmatpush3.msra.mxu0 %v1954_v30  ;;  %2484 = vmatprep.subr.mxu1 %v2747_v50  ;;  %v1988_v30 = vld [vmem:[%s3655_s3 + $0x3d8] sm:$0xff] }
 0x14c   : > { %2513 = vmatprep.subr.mxu0 %v2747_v50  ;;  %2485 = vmatpush3.msra.mxu1 %v1941_v31  ;;  %v2000_v31 = vld [vmem:[%s3655_s3 + $0x430] sm:$0xff] }
 0x14d   : > { %2514 = vmatpush3.msra.mxu0 %v1953_v33  ;;  %2486 = vmatprep.subr.mxu1 %v2747_v50  ;;  %v1987_v33 = vld [vmem:[%s3655_s3 + $0x3d0] sm:$0xff] }
 0x14e   : > { %2515 = vmatprep.subr.mxu0 %v2747_v50  ;;  %2487 = vmatpush3.msra.mxu1 %v1940_v34  ;;  %v1999_v34 = vld [vmem:[%s3655_s3 + $0x428] sm:$0xff] }
 0x14f   : > { %2516 = vmatpush3.msra.mxu0 %v1952_v35  ;;  %2488 = vmatprep.subr.mxu1 %v2747_v50  ;;  %v1986_v35 = vld [vmem:[%s3655_s3 + $0x3c8] sm:$0xff] }
 0x150   : > { %2517 = vmatprep.subr.mxu0 %v2747_v50  ;;  %2489 = vmatpush3.msra.mxu1 %v1939_v36  ;;  %v1998_v36 = vld [vmem:[%s3655_s3 + $0x420] sm:$0xff] }
 0x151   : > { %2518 = vmatpush3.msra.mxu0 %v1951_v37  ;;  %2490 = vmatprep.subr.mxu1 %v2747_v50  ;;  %v1667_v37 = vrot.slane %v3477_v7, 3 }
 0x152   : > { %2519 = vmatprep.subr.mxu0 %v2747_v50  ;;  %2491 = vmatpush3.msra.mxu1 %v1938_v38  ;;  %v1985_v38 = vld [vmem:[%s3655_s3 + $0x3c0] sm:$0xff] }
 0x153   : > { %2520 = vmatpush3.msra.mxu0 %v1950_v39  ;;  %2492 = vmatprep.subr.mxu1 %v2747_v50  ;;  %v1580_v39 = vrot.slane %v3477_v7, 2 }
 0x154   : > { %2521 = vmatprep.subr.mxu0 %v2747_v50  ;;  %2493 = vmatpush3.msra.mxu1 %v1937_v40 }
 0x155   : > { %2522 = vmatpush3.msra.mxu0 %v1949_v41  ;;  %2494 = vmatprep.subr.mxu1 %v2747_v50 }
 0x156   : > { %2523 = vmatprep.subr.mxu0 %v2747_v50  ;;  %2495 = vmatpush3.msra.mxu1 %v1936_v42 }
 0x157   : > { %2524 = vmatpush3.msra.mxu0 %v1948_v43  ;;  %2496 = vmatprep.subr.mxu1 %v2747_v50 }
 0x158   : > { %2525 = vmatprep.subr.mxu0 %v2747_v50  ;;  %2497 = vmatpush3.msra.mxu1 %v1935_v44 }
 0x159   : > { %2526 = vmatpush3.msra.mxu0 %v1947_v45  ;;  %2498 = vmatprep.subr.mxu1 %v2747_v50 }
 0x15a   : > { %2527 = vmatprep.subr.mxu0 %v2747_v50  ;;  %2499 = vmatpush3.msra.mxu1 %v1934_v46 }
 0x15b   : > { %2528 = vmatpush3.msra.mxu0 %v1946_v47  ;;  %2529 = vmatprep.mubr.msk.f32.mxu0 %vm2748_vm1, %v2747_v50 }
 0x15c   : > { %2500 = vmatprep.subr.mxu1 %v2747_v50  ;;  %2530 = vmatmul.mubr.msk.f32.vlgmr.msra.gmra.mxu0 %vm726_vm2, %v1319_v48 }
 0x15d   : > { %2559 = vmatprep.subr.mxu0 %v2747_v50  ;;  %2501 = vmatpush3.msra.mxu1 %v1933_v49 }
 0x15e   : > { %2502 = vmatprep.mubr.msk.f32.mxu1 %vm2748_vm1, %v2747_v50  ;;  %2560 = vmatpush3.msra.mxu0 %v1983_v51 }
 0x15f   : > { %2503 = vmatmul.mubr.msk.f32.vlgmr.msra.gmra.mxu1 %vm726_vm2, %v1232_v52  ;;  %2532 = vmatprep.subr.mxu1 %v2747_v50 }
 0x160   : > { %2561 = vmatprep.subr.mxu0 %v2747_v50  ;;  %2533 = vmatpush3.msra.mxu1 %v1970_v53 }
 0x161   : > { %2562 = vmatpush3.msra.mxu0 %v1982_v54  ;;  %2534 = vmatprep.subr.mxu1 %v2747_v50 }
 0x162   : > { %2563 = vmatprep.subr.mxu0 %v2747_v50  ;;  %2535 = vmatpush3.msra.mxu1 %v1969_v32 }
 0x163   : > { %2564 = vmatpush3.msra.mxu0 %v1981_v55  ;;  %2536 = vmatprep.subr.mxu1 %v2747_v50 }
 0x164   : > { %2565 = vmatprep.subr.mxu0 %v2747_v50  ;;  %2537 = vmatpush3.msra.mxu1 %v1968_v56 }
 0x165   : > { %2566 = vmatpush3.msra.mxu0 %v1980_v57  ;;  %2538 = vmatprep.subr.mxu1 %v2747_v50 }
 0x166   : > { %2567 = vmatprep.subr.mxu0 %v2747_v50  ;;  %2539 = vmatpush3.msra.mxu1 %v1967_v58 }
 0x167   : > { %2568 = vmatpush3.msra.mxu0 %v1979_v59  ;;  %2540 = vmatprep.subr.mxu1 %v2747_v50 }
 0x168   : > { %2569 = vmatprep.subr.mxu0 %v2747_v50  ;;  %2541 = vmatpush3.msra.mxu1 %v1966_v60 }
 0x169   : > { %2570 = vmatpush3.msra.mxu0 %v1978_v61  ;;  %2542 = vmatprep.subr.mxu1 %v2747_v50 }
 0x16a   : > { %2571 = vmatprep.subr.mxu0 %v2747_v50  ;;  %2543 = vmatpush3.msra.mxu1 %v1965_v62 }
 0x16b   : > { %2572 = vmatpush3.msra.mxu0 %v1977_v63  ;;  %2544 = vmatprep.subr.mxu1 %v2747_v50 }
 0x16c   : > { %2573 = vmatprep.subr.mxu0 %v2747_v50  ;;  %2545 = vmatpush3.msra.mxu1 %v1964_v0 }
 0x16d   : > { %2574 = vmatpush3.msra.mxu0 %v1976_v1  ;;  %2546 = vmatprep.subr.mxu1 %v2747_v50 }
 0x16e   : > { %2575 = vmatprep.subr.mxu0 %v2747_v50  ;;  %2547 = vmatpush3.msra.mxu1 %v1963_v2 }
 0x16f   : > { %2576 = vmatpush3.msra.mxu0 %v1975_v3  ;;  %2548 = vmatprep.subr.mxu1 %v2747_v50 }
 0x170   : > { %2577 = vmatprep.subr.mxu0 %v2747_v50  ;;  %2549 = vmatpush3.msra.mxu1 %v1962_v4 }
 0x171   : > { %2578 = vmatpush3.msra.mxu0 %v1974_v5  ;;  %2550 = vmatprep.subr.mxu1 %v2747_v50 }
 0x172   : > { %2579 = vmatprep.subr.mxu0 %v2747_v50  ;;  %2551 = vmatpush3.msra.mxu1 %v1961_v6 }
 0x173   : > { %2580 = vmatpush3.msra.mxu0 %v1973_v8  ;;  %2552 = vmatprep.subr.mxu1 %v2747_v50  ;;  %v1741_v8 = vld [vmem:[%s3656_s4] sm:$0x1] }
 0x174   : > { %2581 = vmatprep.subr.mxu0 %v2747_v50  ;;  %2553 = vmatpush3.msra.mxu1 %v1960_v9 }
 0x175   : > { %2582 = vmatpush3.msra.mxu0 %v1972_v29  ;;  %2583 = vmatprep.mubr.msk.f32.mxu0 %vm2748_vm1, %v2747_v50 }
 0x176   : > { %2554 = vmatprep.subr.mxu1 %v2747_v50  ;;  %2584 = vmatmul.mubr.msk.f32.vlgmr.msra.gmra.mxu0 %vm726_vm2, %v1493_v10 }
 0x177   : > { %2613 = vmatprep.subr.mxu0 %v2747_v50  ;;  %2555 = vmatpush3.msra.mxu1 %v1959_v11 }
 0x178   : > { %2556 = vmatprep.mubr.msk.f32.mxu1 %vm2748_vm1, %v2747_v50  ;;  %2614 = vmatpush3.msra.mxu0 %v2009_v12 }
 0x179   : > { %2557 = vmatmul.mubr.msk.f32.vlgmr.msra.gmra.mxu1 %vm726_vm2, %v3477_v7  ;;  %2586 = vmatprep.subr.mxu1 %v2747_v50 }
 0x17a   : > { %2615 = vmatprep.subr.mxu0 %v2747_v50  ;;  %2587 = vmatpush3.msra.mxu1 %v1996_v13 }
 0x17b   : > { %2616 = vmatpush3.msra.mxu0 %v2008_v14  ;;  %2588 = vmatprep.subr.mxu1 %v2747_v50 }
 0x17c   : > { %2617 = vmatprep.subr.mxu0 %v2747_v50  ;;  %2589 = vmatpush3.msra.mxu1 %v1995_v15 }
 0x17d   : > { %2618 = vmatpush3.msra.mxu0 %v2007_v16  ;;  %2590 = vmatprep.subr.mxu1 %v2747_v50 }
 0x17e   : > { %2619 = vmatprep.subr.mxu0 %v2747_v50  ;;  %2591 = vmatpush3.msra.mxu1 %v1994_v17 }
 0x17f   : > { %2620 = vmatpush3.msra.mxu0 %v2006_v18  ;;  %2592 = vmatprep.subr.mxu1 %v2747_v50 }
 0x180   : > { %2621 = vmatprep.subr.mxu0 %v2747_v50  ;;  %2593 = vmatpush3.msra.mxu1 %v1993_v19 }
 0x181   : > { %2622 = vmatpush3.msra.mxu0 %v2005_v20  ;;  %2594 = vmatprep.subr.mxu1 %v2747_v50 }
 0x182   : > { %2623 = vmatprep.subr.mxu0 %v2747_v50  ;;  %2595 = vmatpush3.msra.mxu1 %v1992_v21 }
 0x183   : > { %2624 = vmatpush3.msra.mxu0 %v2004_v22  ;;  %2596 = vmatprep.subr.mxu1 %v2747_v50 }
 0x184   : > { %2625 = vmatprep.subr.mxu0 %v2747_v50  ;;  %2597 = vmatpush3.msra.mxu1 %v1991_v23 }
 0x185   : > { %2626 = vmatpush3.msra.mxu0 %v2003_v24  ;;  %2598 = vmatprep.subr.mxu1 %v2747_v50 }
 0x186   : > { %2627 = vmatprep.subr.mxu0 %v2747_v50  ;;  %2599 = vmatpush3.msra.mxu1 %v1990_v25 }
 0x187   : > { %2628 = vmatpush3.msra.mxu0 %v2002_v26  ;;  %2600 = vmatprep.subr.mxu1 %v2747_v50 }
 0x188   : > { %2629 = vmatprep.subr.mxu0 %v2747_v50  ;;  %2601 = vmatpush3.msra.mxu1 %v1989_v27 }
 0x189   : > { %2630 = vmatpush3.msra.mxu0 %v2001_v28  ;;  %2602 = vmatprep.subr.mxu1 %v2747_v50 }
 0x18a   : > { %2631 = vmatprep.subr.mxu0 %v2747_v50  ;;  %2603 = vmatpush3.msra.mxu1 %v1988_v30 }
 0x18b   : > { %2632 = vmatpush3.msra.mxu0 %v2000_v31  ;;  %2604 = vmatprep.subr.mxu1 %v2747_v50 }
 0x18c   : > { %2633 = vmatprep.subr.mxu0 %v2747_v50  ;;  %2605 = vmatpush3.msra.mxu1 %v1987_v33 }
 0x18d   : > { %2634 = vmatpush3.msra.mxu0 %v1999_v34  ;;  %2606 = vmatprep.subr.mxu1 %v2747_v50 }
 0x18e   : > { %2635 = vmatprep.subr.mxu0 %v2747_v50  ;;  %2607 = vmatpush3.msra.mxu1 %v1986_v35 }
 0x18f   : > { %2636 = vmatpush3.msra.mxu0 %v1998_v36  ;;  %2637 = vmatprep.mubr.msk.f32.mxu0 %vm2748_vm1, %v2747_v50 }
 0x190   : > { %2608 = vmatprep.subr.mxu1 %v2747_v50  ;;  %2638 = vmatmul.mubr.msk.f32.vlgmr.msra.gmra.mxu0 %vm726_vm2, %v1667_v37 }
 0x191   : > { %2609 = vmatpush3.msra.mxu1 %v1985_v38  ;;  %2610 = vmatprep.mubr.msk.f32.mxu1 %vm2748_vm1, %v2747_v50 }
 0x192   : > { %2611 = vmatmul.mubr.msk.f32.vlgmr.msra.gmra.mxu1 %vm726_vm2, %v1580_v39 }
 0x1d0   : > { %v867_v40 = vpop.f32.mrf.mxu0 }
 0x1d2   : > { %v795_v41 = vpop.f32.mrf.mxu1  ;;  %v2369_v42 = vpop.f32.mrf.mxu0 }
 0x1d3   : > { %v868_v43 = vadd.f32 %v867_v40, %v795_v41 }
 0x1d4   : > { %v2342_v44 = vpop.f32.mrf.mxu1 }
 0x1e8   : > { %v1040_v45 = vpop.f32.mrf.mxu0 }
 0x1ea   : > { %v2423_v46 = vpop.f32.mrf.mxu0 }
 0x1eb   : > { %v953_v47 = vpop.f32.mrf.mxu1 }
 0x1ec   : > { %v957_v48 = vadd.f32 %v953_v47, %v868_v43 }
 0x1ed   : > { %v2396_v49 = vpop.f32.mrf.mxu1 }
 0x1ee   : > { %v1044_v51 = vadd.f32 %v1040_v45, %v957_v48 }
 0x202   : > { %v1214_v52 = vpop.f32.mrf.mxu0 }
 0x204   : > { %v2477_v53 = vpop.f32.mrf.mxu0 }
 0x205   : > { %v1127_v54 = vpop.f32.mrf.mxu1 }
 0x206   : > { %v1131_v32 = vadd.f32 %v1127_v54, %v1044_v51 }
 0x207   : > { %v2450_v55 = vpop.f32.mrf.mxu1 }
 0x208   : > { %v1218_v56 = vadd.f32 %v1214_v52, %v1131_v32 }
 0x21c   : > { %v1388_v50 = vpop.f32.mrf.mxu0 }
 0x21e   : > { %v2531_v57 = vpop.f32.mrf.mxu0 }
 0x21f   : > { %v1301_v58 = vpop.f32.mrf.mxu1 }
 0x220   : > { %v1305_v0 = vadd.f32 %v1301_v58, %v1218_v56 }
 0x221   : > { %v2504_v59 = vpop.f32.mrf.mxu1 }
 0x222   : > { %v1392_v1 = vadd.f32 %v1388_v50, %v1305_v0 }
 0x236   : > { %v1562_v60 = vpop.f32.mrf.mxu0 }
 0x238   : > { %v2585_v61 = vpop.f32.mrf.mxu0 }
 0x239   : > { %v1475_v62 = vpop.f32.mrf.mxu1 }
 0x23a   : > { %v1479_v2 = vadd.f32 %v1475_v62, %v1392_v1 }
 0x23b   : > { %v2558_v63 = vpop.f32.mrf.mxu1 }
 0x23c   : > { %v1566_v4 = vadd.f32 %v1562_v60, %v1479_v2 }
 0x250   : > { %v1736_v3 = vpop.f32.mrf.mxu0 }
 0x252   : > { %v1649_v5 = vpop.f32.mrf.mxu1  ;;  %v2639_v6 = vpop.f32.mrf.mxu0 }
 0x253   : > { %v1653_v7 = vadd.f32 %v1649_v5, %v1566_v4 }
 0x254   : > { %v2612_v9 = vpop.f32.mrf.mxu1 }
 0x255   : > { %v1740_v29 = vadd.f32 %v1736_v3, %v1653_v7 }
 0x257   : > { %v1742_v10 = vadd.f32 %v1741_v8, %v1740_v29 }
 0x259   : > { %v1743_v11 = vsub.f32 0.0, %v1742_v10 }
 0x25b   : > { %v1744_v12 = vmul.f32 1.442695, %v1743_v11 }
 0x25d   : > { %2681 = vpow2.f32 %v1744_v12 }
 0x26a   : > { %v2682_v13 = vpop.eup %2681 }
 0x26b   : > { %v1746_v14 = vadd.f32 1.0, %v2682_v13 }
 0x26d   : > { %2683 = vrcp.f32 %v1746_v14 }
 0x27a   : > { %v2684_v15 = vpop.eup %2683 }
 0x27b   : > { %1749 = vst [vmem:[%s216_s17] sm:$0x1] %v2684_v15 }
 0x27c   : > { %2698 = shalt.err (!%p2695_p3)
}
 0x27d   : > { %s2699_s12 = scalar_lea.hbm %s3617_s7, 16  ;;  %s2703_s15 = scalar_lea.hbm %s3657_s5, 32 }
 0x27e   : > { %p2700_p4 = scmp.ne.s32.totalorder %s3617_s7, %s2699_s12  ;;  %p2704_p9 = scmp.lt.s32.totalorder %s3617_s7, %s3657_s5 }
 0x27f   : > { %p2705_p10 = scmp.lt.s32.totalorder %s2703_s15, %s2699_s12 }
 0x280   : > { %p2701_p7 = pnand %p2700_p4, %p2818_p5 }
 0x281   : > { %p2706_p11 = por %p2705_p10, %p2704_p9 }
 0x282   : > { %p2702_p8 = pneg %p2701_p7 }
 0x284   : > { %p2707_p12 = pnand %p2706_p11, %p2702_p8 }
 0x286   : > { %2710 = shalt.err (!%p2707_p12)
}
 0x287   : > { %2640 = dma.vmem_to_hbm [thread:$0]  (%p2818_p5), %s1764_s25, 16, %s3617_s7, %s1751_s8  }
 0x288 PF: > { %p2646_p13 = scmp.ge.s32.totalorder %s2745_s21, 2  ;;  %s1775_s23 = sand.u32 1, %s2733_s18  }
 0x289   : > { %s1776_s17 = scalar_lea.sflag [#allocation3], %s1775_s23 }
 0x28a   : > { %p2643_p0 = pnand %p2646_p13, %p2822_p6 }
 0x28c   : > { %p2644_p1 = pneg %p2643_p0 }
 0x28e   : > { %2728 = dma.done.wait (%p2644_p1), %s1776_s17, 16  }
 0x28f   : > { %2730 = vsyncadd (%p2644_p1), %s1776_s17, 4294967280  ;;  %p15_p2 = scmp.ge.s32.totalorder %s2805_s24, 4   ;;  %s3660_s18 = smov %s2737_s19 }
 0x290   : > { %s3661_s19 = smov %s2741_s20  ;;  %s3662_s20 = smov %s2816_s27 }
 0x291   : > { %s3663_s21 = smov %s2805_s24  ;;  %17 = sbr.rel (!%p15_p2) target bundleno = 3 (0x3), region = 90 }
 0x296   :  { %1780 = vsyncpa [#allocation3], 1 }
 0x297   :  { %1782 = vsyncpa [#allocation3 + $0x1], 1 }

</bundles_post_ra>
